<compile_context>
chip_gen: v7x
topology: tpu7x:2x2x1
jax: 0.10.0
libtpu: 0.0.40
codegen_flags: <defaults>
</compile_context>

<pallas_src>
import functools

import jax
import jax.numpy as jnp
from jax import lax
from jax.experimental import pallas as pl
from jax.experimental.pallas import tpu as pltpu

EPS = 1e-5        # PyTorch BatchNorm default eps
_NEG_BIG = -1e30  # finite "-inf" for masked kv columns (keeps exp/max NaN-free)


# ----------------------------- Pallas kernel -------------------------------

def _nonlocal_fused_kernel(xq_ref, xkv_ref,
                           wq_ref, bq_ref, wkv_ref, bkv_ref, wo_ref, bo_ref,
                           z_ref,
                           kv_sc, theta_sc, m_sc, l_sc, acc_sc,
                           *, n_valid, n_pad, ipad, cache_kv):
    """Fused embedded-gaussian non-local block.

    Grid = (B, n_q, n_k).  All matmuls take bf16 operands with f32 accumulation.
    Per (b, qi): iterate kv tiles with an online-softmax accumulator in VMEM;
    on the last kv tile apply the (BN-folded) W projection plus the residual
    add.  The phi|g projection of the whole (padded) sequence is computed once
    per batch item (qi == 0) and cached in VMEM when `cache_kv` is set.
    """
    qi = pl.program_id(1)
    ki = pl.program_id(2)

    @pl.when(ki == 0)
    def _init():
        xq = xq_ref[...].astype(jnp.bfloat16)                         # (tq, Cp)
        th = jnp.dot(xq, wq_ref[...],
                     preferred_element_type=jnp.float32) + bq_ref[...]
        theta_sc[...] = th.astype(jnp.bfloat16)                       # (tq, Ip)
        m_sc[...] = jnp.full_like(m_sc, -jnp.inf)
        l_sc[...] = jnp.zeros_like(l_sc)
        acc_sc[...] = jnp.zeros_like(acc_sc)

    def _project_kv():
        xkv = xkv_ref[...].astype(jnp.bfloat16)                       # (tk, Cp)
        kv = jnp.dot(xkv, wkv_ref[...],
                     preferred_element_type=jnp.float32) + bkv_ref[...]
        return kv.astype(jnp.bfloat16)                                # (tk, 2Ip)

    if cache_kv:
        # Fill the per-batch-item phi|g cache on the first query tile; later
        # query tiles read it back (their x_kv HBM stream is frozen to block 0
        # by the index map, so the raw activation is only streamed once).
        @pl.when(qi == 0)
        def _fill():
            kv_sc[ki] = _project_kv()
        kv = kv_sc[ki]
    else:
        kv = _project_kv()

    phi = kv[:, :ipad]                                                # (tk, Ip)
    g = kv[:, ipad:]                                                  # (tk, Ip)

    # scores: contract the I axis of BOTH operands (no explicit phi.T relayout)
    s = lax.dot_general(theta_sc[...], phi, (((1,), (1,)), ((), ())),
                        preferred_element_type=jnp.float32)           # (tq, tk)
    if n_valid != n_pad:
        tk = s.shape[-1]
        col = ki * tk + lax.broadcasted_iota(jnp.int32, (1, tk), 1)
        s = jnp.where(col < n_valid, s, _NEG_BIG)

    # online softmax update (m/l/acc kept in f32; p fed to the MXU in bf16)
    m_prev = m_sc[...]
    m_new = jnp.maximum(m_prev, jnp.max(s, axis=-1, keepdims=True))
    alpha = jnp.exp(m_prev - m_new)
    p = jnp.exp(s - m_new)
    l_sc[...] = alpha * l_sc[...] + jnp.sum(p, axis=-1, keepdims=True)
    acc_sc[...] = alpha * acc_sc[...] + jnp.dot(
        p.astype(jnp.bfloat16), g, preferred_element_type=jnp.float32)
    m_sc[...] = m_new

    @pl.when(ki == pl.num_programs(2) - 1)
    def _finalize():
        # softmax denominator via EUP reciprocal + one Newton step (~f32 acc.)
        l = l_sc[...]
        r = pl.reciprocal(l, approx=True)
        r = r * (2.0 - l * r)
        y = (acc_sc[...] * r).astype(jnp.bfloat16)                    # (tq, Ip)
        # W (1x1x1 conv, BN scale folded into wo) + BN shift + f32 residual add
        wy = jnp.dot(y, wo_ref[...],
                     preferred_element_type=jnp.float32) + bo_ref[...]
        z_ref[...] = (wy + xq_ref[...]).astype(z_ref.dtype)


# ------------------------------- wrappers -----------------------------------

def fold_bn(gamma, beta, mean, var, conv_bias=None):
    scale = gamma / jnp.sqrt(var + EPS)
    shift = beta - mean * scale
    if conv_bias is not None:
        shift = shift + conv_bias * scale
    return scale, shift


def _round_up(x, m):
    return ((x + m - 1) // m) * m


def _const_spec(shape):
    """Grid-invariant weight/bias spec; single-buffered to save VMEM."""
    idx = lambda b, qi, ki: (0, 0)
    try:
        return pl.BlockSpec(shape, idx, pipeline_mode=pl.Buffered(1))
    except Exception:  # older jax without pipeline_mode / Buffered
        return pl.BlockSpec(shape, idx)


def nonlocal_block_embedded_gaussian(x_bnc, params, *, tile_cap=None):
    """x_bnc: (B, N, C) channels-last.  Returns z: (B, N, C)."""
    B, N, C = x_bnc.shape
    inter = params['theta_w'].shape[1]

    # --- VMEM budget (v5e/v6e: 128 MiB physical, v7x: 64 MiB per core) --------
    try:
        vmem_cap = int(pltpu.get_tpu_info().vmem_capacity_bytes)
    except Exception:
        vmem_cap = 0
    if vmem_cap < (32 << 20):
        vmem_cap = 64 << 20           # conservative fallback (v7x per-core VMEM)
    if tile_cap is None:
        tile_cap = 1024 if vmem_cap >= (100 << 20) else 512

    # --- padded geometry (numerically exact zero padding) ---------------------
    cpad = _round_up(C, 128)          # lane-dense loads/stores on the C axis
    ipad = _round_up(inter, 128)      # full-lane MXU contraction over inter
    tile = min(tile_cap, _round_up(N, 8))
    npad = _round_up(N, tile)
    n_q = npad // tile
    n_k = npad // tile
    tq = tk = tile

    # cache the full (Npad, 2*Ipad) bf16 phi|g projection per batch item iff it
    # fits comfortably next to the other buffers
    cache_kv = (npad * 2 * ipad * 2) <= (vmem_cap // 4)
    kv_rows = n_k if cache_kv else 1

    # --- host-side parameter prep (bf16 weights, fused phi|g, BN fold) --------
    def pad2(w, r, c):
        return jnp.pad(w, ((0, r - w.shape[0]), (0, c - w.shape[1])))

    def pad1(v, c):
        return jnp.pad(v, (0, c - v.shape[0]))

    w_theta = pad2(params['theta_w'], cpad, ipad).astype(jnp.bfloat16)
    b_theta = pad1(params['theta_b'], ipad).reshape(1, ipad).astype(jnp.float32)
    w_kv = jnp.concatenate([pad2(params['phi_w'], cpad, ipad),
                            pad2(params['g_w'], cpad, ipad)], axis=1)
    w_kv = w_kv.astype(jnp.bfloat16)
    b_kv = jnp.concatenate([pad1(params['phi_b'], ipad),
                            pad1(params['g_b'], ipad)])
    b_kv = b_kv.reshape(1, 2 * ipad).astype(jnp.float32)
    # BN (inference mode) folded into W: scale into weight columns, shift (incl.
    # the conv bias) stays as an additive f32 epilogue term.
    sW, bW = fold_bn(conv_bias=params['W_b'], **params['W_bn'])
    w_out = pad2(params['W_w'] * sW[None, :], ipad, cpad).astype(jnp.bfloat16)
    b_out = pad1(bW, cpad).reshape(1, cpad).astype(jnp.float32)

    # zero-pad the activation: padded kv rows are masked in-kernel; padded q
    # rows / channels are sliced off below
    xp = x_bnc
    if npad != N or cpad != C:
        xp = jnp.pad(x_bnc, ((0, 0), (0, npad - N), (0, cpad - C)))

    # --- specs -----------------------------------------------------------------
    xq_spec = pl.BlockSpec((pl.Squeezed(), tq, cpad), lambda b, qi, ki: (b, qi, 0))
    if cache_kv:
        # after the cache is filled (qi > 0) keep requesting block 0 so the raw
        # activation kv stream is only read from HBM once per batch item
        xkv_spec = pl.BlockSpec(
            (pl.Squeezed(), tk, cpad),
            lambda b, qi, ki: (b, jnp.where(qi == 0, ki, 0), 0))
        # qi must stay sequential per core so the qi==0 cache fill always runs;
        # the batch axis still feeds both v7x TensorCores.
        dims = ("parallel", "arbitrary", "arbitrary")
    else:
        xkv_spec = pl.BlockSpec((pl.Squeezed(), tk, cpad),
                                lambda b, qi, ki: (b, ki, 0))
        dims = ("parallel", "parallel", "arbitrary")

    kernel = functools.partial(_nonlocal_fused_kernel, n_valid=N, n_pad=npad,
                               ipad=ipad, cache_kv=cache_kv)

    out = pl.pallas_call(
        kernel,
        out_shape=jax.ShapeDtypeStruct((B, npad, cpad), x_bnc.dtype),
        grid=(B, n_q, n_k),
        in_specs=[
            xq_spec,                             # x rows: query tile + residual
            xkv_spec,                            # x rows: kv tile
            _const_spec((cpad, ipad)), _const_spec((1, ipad)),           # theta
            _const_spec((cpad, 2 * ipad)), _const_spec((1, 2 * ipad)),   # phi|g
            _const_spec((ipad, cpad)), _const_spec((1, cpad)),           # W/BN
        ],
        out_specs=pl.BlockSpec((pl.Squeezed(), tq, cpad),
                               lambda b, qi, ki: (b, qi, 0)),
        scratch_shapes=[
            pltpu.VMEM((kv_rows, tk, 2 * ipad), jnp.bfloat16),  # phi|g cache
            pltpu.VMEM((tq, ipad), jnp.bfloat16),               # theta tile
            pltpu.VMEM((tq, 1), jnp.float32),                   # running max
            pltpu.VMEM((tq, 1), jnp.float32),                   # running denom
            pltpu.VMEM((tq, ipad), jnp.float32),                # output accum
        ],
        compiler_params=pltpu.CompilerParams(
            dimension_semantics=dims,
            vmem_limit_bytes=int(vmem_cap * 0.8)),
    )(xp, xp, w_theta, b_theta, w_kv, b_kv, w_out, b_out)

    if npad != N or cpad != C:
        out = out[:, :N, :C]
    return out


def nonlocal_block_forward(x_ncdhw, params, tile_cap=None):
    """_NonLocalBlockND.forward (embedded_gaussian, dim=3, bn_layer=True)."""
    # TODO(synk): the two transposes below are boundary glue only; in a full
    # network keep activations channels-last and call the (B,N,C) entry point.
    B, C, T, H, W = x_ncdhw.shape
    N = T * H * W
    x_bnc = jnp.transpose(x_ncdhw, (0, 2, 3, 4, 1)).reshape(B, N, C)
    z = nonlocal_block_embedded_gaussian(x_bnc, params, tile_cap=tile_cap)
    return jnp.transpose(z.reshape(B, T, H, W, C), (0, 4, 1, 2, 3))


# --------------------------- pure-JAX reference -----------------------------

def nonlocal_reference(x_ncdhw, params):
    B, C, T, H, W = x_ncdhw.shape
    N = T * H * W
    x = x_ncdhw.reshape(B, C, N)

    def conv1x1(x_bcn, w, b):                     # w: (Cin, Cout)
        return jnp.einsum('bcn,co->bon', x_bcn, w) + b[None, :, None]

    g_x = conv1x1(x, params['g_w'], params['g_b'])
    theta_x = conv1x1(x, params['theta_w'], params['theta_b'])
    phi_x = conv1x1(x, params['phi_w'], params['phi_b'])
    f = jnp.einsum('bin,bim->bnm', theta_x, phi_x)
    f = jax.nn.softmax(f, axis=-1)
    y = jnp.einsum('bnm,bim->bin', f, g_x)
    W_y = conv1x1(y, params['W_w'], params['W_b'])
    sW = params['W_bn']['gamma'] / jnp.sqrt(params['W_bn']['var'] + EPS)
    shW = params['W_bn']['beta'] - params['W_bn']['mean'] * sW
    W_y = W_y * sW[None, :, None] + shW[None, :, None]
    return (W_y + x).reshape(B, C, T, H, W)


# --------------------------------- params -----------------------------------

def init_params(C, key):
    inter = max(C // 2, 1)
    ks = jax.random.split(key, 4)

    def w(k, shape, s=0.05):
        return s * jax.random.normal(k, shape, jnp.float32)

    i_i = jnp.arange(inter, dtype=jnp.float32)
    i_c = jnp.arange(C, dtype=jnp.float32)
    return {
        'theta_w': w(ks[0], (C, inter)), 'theta_b': 0.02 * i_i,
        'phi_w': w(ks[1], (C, inter)),   'phi_b': 0.03 * i_i,
        'g_w': w(ks[2], (C, inter)),     'g_b': 0.01 * i_i,
        'W_w': w(ks[3], (inter, C)),     'W_b': 0.01 * i_c,
        # NOTE: PyTorch inits the W BatchNorm with gamma=beta=0 (so z == x
        # exactly); we use nonzero stats so the attention path is actually
        # exercised numerically.
        'W_bn': dict(gamma=0.5 + 0.01 * i_c, beta=0.02 * i_c - 0.1,
                     mean=0.01 * i_c - 0.05, var=1.0 + 0.02 * i_c),
    }


# ----------------------------------- main ------------------------------------

if __name__ == "__main__":
    fwd = jax.jit(nonlocal_block_forward, static_argnames=("tile_cap",))

    # Case 1: aligned shapes, small tile cap so the multi-tile online softmax,
    # the phi|g cache reuse across query tiles and the frozen kv stream are all
    # exercised.  in_channels=32 -> inter=16, N = 4*8*8 = 256, grid (2, 2, 2).
    B, C, T, H, W = 2, 32, 4, 8, 8
    x = jax.random.normal(jax.random.PRNGKey(0), (B, C, T, H, W), jnp.float32)
    params = init_params(C, jax.random.PRNGKey(1))
    out = jax.block_until_ready(fwd(x, params, tile_cap=128))
    ref = nonlocal_reference(x, params)
    assert out.shape == x.shape and out.dtype == x.dtype
    assert bool(jnp.all(jnp.isfinite(out)))
    err = float(jnp.max(jnp.abs(out - ref)))
    # bf16 MXU inputs (f32 accumulation) -> ~1e-3-level parity, not exact.
    assert bool(jnp.allclose(out, ref, rtol=2e-3, atol=2e-3)), err

    # Case 2: ragged N (=75) and C (=24) -> exercises zero padding of N/C/inter
    # and the in-kernel kv masking path.
    B2, C2, T2, H2, W2 = 1, 24, 3, 5, 5
    x2 = jax.random.normal(jax.random.PRNGKey(2), (B2, C2, T2, H2, W2),
                           jnp.float32)
    params2 = init_params(C2, jax.random.PRNGKey(3))
    out2 = jax.block_until_ready(fwd(x2, params2))
    ref2 = nonlocal_reference(x2, params2)
    assert out2.shape == x2.shape
    assert bool(jnp.all(jnp.isfinite(out2)))
    err2 = float(jnp.max(jnp.abs(out2 - ref2)))
    assert bool(jnp.allclose(out2, ref2, rtol=2e-3, atol=2e-3)), err2

    print("KERNEL_OK")
</pallas_src>

<mosaic_0001>
module attributes {stable_mosaic.version = 11 : i64} {
  func.func @_nonlocal_fused_kernel(%arg0: i32, %arg1: i32, %arg2: i32, %arg3: memref<1x128x128xf32, #tpu.memory_space<vmem>>, %arg4: memref<1x128x128xf32, #tpu.memory_space<vmem>>, %arg5: memref<128x128xbf16, #tpu.memory_space<vmem>>, %arg6: memref<1x128xf32, #tpu.memory_space<vmem>>, %arg7: memref<128x256xbf16, #tpu.memory_space<vmem>>, %arg8: memref<1x256xf32, #tpu.memory_space<vmem>>, %arg9: memref<128x128xbf16, #tpu.memory_space<vmem>>, %arg10: memref<1x128xf32, #tpu.memory_space<vmem>>, %arg11: memref<1x128x128xf32, #tpu.memory_space<vmem>>, %arg12: memref<2x128x256xbf16, #tpu.memory_space<vmem>>, %arg13: memref<128x128xbf16, #tpu.memory_space<vmem>>, %arg14: memref<128x1xf32, #tpu.memory_space<vmem>>, %arg15: memref<128x1xf32, #tpu.memory_space<vmem>>, %arg16: memref<128x128xf32, #tpu.memory_space<vmem>>) attributes {dimension_semantics = [#tpu.dimension_semantics<parallel>, #tpu.dimension_semantics<arbitrary>, #tpu.dimension_semantics<arbitrary>], iteration_bounds = array<i64: 2, 2, 2>, scalar_prefetch = 0 : i64, scratch_operands = 5 : i64, tpu.core_type = #tpu.core_type<tc>, window_params = [{transform_indices = @transform_0, window_bounds = array<i64: 1, 128, 128>}, {transform_indices = @transform_1, window_bounds = array<i64: 1, 128, 128>}, {pipeline_mode = #tpu.pipeline_mode<synchronous>, transform_indices = @transform_2, window_bounds = array<i64: 128, 128>}, {pipeline_mode = #tpu.pipeline_mode<synchronous>, transform_indices = @transform_3, window_bounds = array<i64: 1, 128>}, {pipeline_mode = #tpu.pipeline_mode<synchronous>, transform_indices = @transform_4, window_bounds = array<i64: 128, 256>}, {pipeline_mode = #tpu.pipeline_mode<synchronous>, transform_indices = @transform_5, window_bounds = array<i64: 1, 256>}, {pipeline_mode = #tpu.pipeline_mode<synchronous>, transform_indices = @transform_6, window_bounds = array<i64: 128, 128>}, {pipeline_mode = #tpu.pipeline_mode<synchronous>, transform_indices = @transform_7, window_bounds = array<i64: 1, 128>}, {transform_indices = @transform_8, window_bounds = array<i64: 1, 128, 128>}]} {
    %c0_i32 = arith.constant 0 : i32
    %0 = arith.cmpi eq, %arg2, %c0_i32 : i32
    %1 = arith.extui %0 : i1 to i32
    %c0_i32_0 = arith.constant 0 : i32
    %2 = arith.cmpi ne, %1, %c0_i32_0 : i32
    scf.if %2 {
      %c0_22 = arith.constant 0 : index
      %c0_23 = arith.constant 0 : index
      %c0_24 = arith.constant 0 : index
      %39 = vector.load %arg3[%c0_22, %c0_23, %c0_24] : memref<1x128x128xf32, #tpu.memory_space<vmem>>, vector<1x128x128xf32>
      %40 = vector.shape_cast %39 : vector<1x128x128xf32> to vector<128x128xf32>
      %41 = arith.truncf %40 : vector<128x128xf32> to vector<128x128xbf16>
      %c0_25 = arith.constant 0 : index
      %c0_26 = arith.constant 0 : index
      %42 = vector.load %arg5[%c0_25, %c0_26] : memref<128x128xbf16, #tpu.memory_space<vmem>>, vector<128x128xbf16>
      %cst_27 = arith.constant dense<0.000000e+00> : vector<128x128xf32>
      %43 = tpu.matmul %41, %42, %cst_27 {dimension_numbers = #tpu.dot_dimension_numbers<[1], [0], [0], [1], [0, 0, 1, 1], [], []>} : vector<128x128xbf16>, vector<128x128xbf16>, vector<128x128xf32> -> vector<128x128xf32>
      %c0_28 = arith.constant 0 : index
      %c0_29 = arith.constant 0 : index
      %44 = vector.load %arg6[%c0_28, %c0_29] : memref<1x128xf32, #tpu.memory_space<vmem>>, vector<1x128xf32>
      %45 = vector.broadcast %44 : vector<1x128xf32> to vector<128x128xf32>
      %46 = arith.addf %43, %45 : vector<128x128xf32>
      %47 = arith.truncf %46 : vector<128x128xf32> to vector<128x128xbf16>
      %c0_30 = arith.constant 0 : index
      %c0_31 = arith.constant 0 : index
      %48 = vector.load %arg13[%c0_30, %c0_31] : memref<128x128xbf16, #tpu.memory_space<vmem>>, vector<128x128xbf16>
      tpu.vector_store %arg13[%c0_30, %c0_31], %47 {strides = array<i32>} : memref<128x128xbf16, #tpu.memory_space<vmem>>, vector<128x128xbf16>,
      %cst_32 = arith.constant 0xFF800000 : f32
      %49 = vector.broadcast %cst_32 : f32 to vector<128x1xf32>
      %c0_33 = arith.constant 0 : index
      %c0_34 = arith.constant 0 : index
      %50 = vector.load %arg14[%c0_33, %c0_34] : memref<128x1xf32, #tpu.memory_space<vmem>>, vector<128x1xf32>
      tpu.vector_store %arg14[%c0_33, %c0_34], %49 {strides = array<i32>} : memref<128x1xf32, #tpu.memory_space<vmem>>, vector<128x1xf32>,
      %cst_35 = arith.constant 0.000000e+00 : f32
      %51 = vector.broadcast %cst_35 : f32 to vector<128x1xf32>
      %c0_36 = arith.constant 0 : index
      %c0_37 = arith.constant 0 : index
      %52 = vector.load %arg15[%c0_36, %c0_37] : memref<128x1xf32, #tpu.memory_space<vmem>>, vector<128x1xf32>
      tpu.vector_store %arg15[%c0_36, %c0_37], %51 {strides = array<i32>} : memref<128x1xf32, #tpu.memory_space<vmem>>, vector<128x1xf32>,
      %cst_38 = arith.constant 0.000000e+00 : f32
      %53 = vector.broadcast %cst_38 : f32 to vector<128x128xf32>
      %c0_39 = arith.constant 0 : index
      %c0_40 = arith.constant 0 : index
      %54 = vector.load %arg16[%c0_39, %c0_40] : memref<128x128xf32, #tpu.memory_space<vmem>>, vector<128x128xf32>
      tpu.vector_store %arg16[%c0_39, %c0_40], %53 {strides = array<i32>} : memref<128x128xf32, #tpu.memory_space<vmem>>, vector<128x128xf32>,
    } else {
    }
    %c0_i32_1 = arith.constant 0 : i32
    %3 = arith.cmpi eq, %arg1, %c0_i32_1 : i32
    %4 = arith.extui %3 : i1 to i32
    %c0_i32_2 = arith.constant 0 : i32
    %5 = arith.cmpi ne, %4, %c0_i32_2 : i32
    scf.if %5 {
      %c0_22 = arith.constant 0 : index
      %c0_23 = arith.constant 0 : index
      %c0_24 = arith.constant 0 : index
      %39 = vector.load %arg4[%c0_22, %c0_23, %c0_24] : memref<1x128x128xf32, #tpu.memory_space<vmem>>, vector<1x128x128xf32>
      %40 = vector.shape_cast %39 : vector<1x128x128xf32> to vector<128x128xf32>
      %41 = arith.truncf %40 : vector<128x128xf32> to vector<128x128xbf16>
      %c0_25 = arith.constant 0 : index
      %c0_26 = arith.constant 0 : index
      %42 = vector.load %arg7[%c0_25, %c0_26] : memref<128x256xbf16, #tpu.memory_space<vmem>>, vector<128x256xbf16>
      %cst_27 = arith.constant dense<0.000000e+00> : vector<128x256xf32>
      %43 = tpu.matmul %41, %42, %cst_27 {dimension_numbers = #tpu.dot_dimension_numbers<[1], [0], [0], [1], [0, 0, 1, 1], [], []>} : vector<128x128xbf16>, vector<128x256xbf16>, vector<128x256xf32> -> vector<128x256xf32>
      %c0_28 = arith.constant 0 : index
      %c0_29 = arith.constant 0 : index
      %44 = vector.load %arg8[%c0_28, %c0_29] : memref<1x256xf32, #tpu.memory_space<vmem>>, vector<1x256xf32>
      %45 = vector.broadcast %44 : vector<1x256xf32> to vector<128x256xf32>
      %46 = arith.addf %43, %45 : vector<128x256xf32>
      %47 = arith.truncf %46 : vector<128x256xf32> to vector<128x256xbf16>
      %48 = arith.index_cast %arg2 : i32 to index
      %c0_30 = arith.constant 0 : index
      %c0_31 = arith.constant 0 : index
      %49 = vector.load %arg12[%48, %c0_30, %c0_31] : memref<2x128x256xbf16, #tpu.memory_space<vmem>>, vector<1x128x256xbf16>
      %50 = vector.shape_cast %49 : vector<1x128x256xbf16> to vector<128x256xbf16>
      %51 = vector.shape_cast %47 : vector<128x256xbf16> to vector<1x128x256xbf16>
      tpu.vector_store %arg12[%48, %c0_30, %c0_31], %51 {strides = array<i32>} : memref<2x128x256xbf16, #tpu.memory_space<vmem>>, vector<1x128x256xbf16>,
    } else {
    }
    %6 = arith.index_cast %arg2 : i32 to index
    %c0 = arith.constant 0 : index
    %c0_3 = arith.constant 0 : index
    %7 = vector.load %arg12[%6, %c0, %c0_3] : memref<2x128x256xbf16, #tpu.memory_space<vmem>>, vector<1x128x256xbf16>
    %8 = vector.shape_cast %7 : vector<1x128x256xbf16> to vector<128x256xbf16>
    %9 = vector.extract_strided_slice %8 {offsets = [0, 0], sizes = [128, 128], strides = [1, 1]} : vector<128x256xbf16> to vector<128x128xbf16>
    %10 = vector.extract_strided_slice %8 {offsets = [0, 128], sizes = [128, 128], strides = [1, 1]} : vector<128x256xbf16> to vector<128x128xbf16>
    %c0_4 = arith.constant 0 : index
    %c0_5 = arith.constant 0 : index
    %11 = vector.load %arg13[%c0_4, %c0_5] : memref<128x128xbf16, #tpu.memory_space<vmem>>, vector<128x128xbf16>
    %cst = arith.constant dense<0.000000e+00> : vector<128x128xf32>
    %12 = tpu.matmul %11, %9, %cst {dimension_numbers = #tpu.dot_dimension_numbers<[1], [1], [0], [0], [0, 0, 1, 0], [], []>} : vector<128x128xbf16>, vector<128x128xbf16>, vector<128x128xf32> -> vector<128x128xf32>
    %c0_6 = arith.constant 0 : index
    %c0_7 = arith.constant 0 : index
    %13 = vector.load %arg14[%c0_6, %c0_7] : memref<128x1xf32, #tpu.memory_space<vmem>>, vector<128x1xf32>
    %cst_8 = arith.constant dense<0xFF800000> : vector<128xf32>
    %14 = vector.multi_reduction <maximumf>, %12, %cst_8 [1] : vector<128x128xf32> to vector<128xf32>
    %15 = vector.shape_cast %14 : vector<128xf32> to vector<128x1xf32>
    %16 = arith.maximumf %13, %15 : vector<128x1xf32>
    %17 = arith.subf %13, %16 : vector<128x1xf32>
    %18 = math.exp %17 : vector<128x1xf32>
    %19 = vector.broadcast %16 : vector<128x1xf32> to vector<128x128xf32>
    %20 = arith.subf %12, %19 : vector<128x128xf32>
    %21 = math.exp %20 : vector<128x128xf32>
    %c0_9 = arith.constant 0 : index
    %c0_10 = arith.constant 0 : index
    %22 = vector.load %arg15[%c0_9, %c0_10] : memref<128x1xf32, #tpu.memory_space<vmem>>, vector<128x1xf32>
    %23 = arith.mulf %18, %22 : vector<128x1xf32>
    %cst_11 = arith.constant dense<0.000000e+00> : vector<128xf32>
    %24 = vector.multi_reduction <add>, %21, %cst_11 [1] : vector<128x128xf32> to vector<128xf32>
    %25 = vector.shape_cast %24 : vector<128xf32> to vector<128x1xf32>
    %26 = arith.addf %23, %25 : vector<128x1xf32>
    %c0_12 = arith.constant 0 : index
    %c0_13 = arith.constant 0 : index
    %27 = vector.load %arg15[%c0_12, %c0_13] : memref<128x1xf32, #tpu.memory_space<vmem>>, vector<128x1xf32>
    tpu.vector_store %arg15[%c0_12, %c0_13], %26 {strides = array<i32>} : memref<128x1xf32, #tpu.memory_space<vmem>>, vector<128x1xf32>,
    %c0_14 = arith.constant 0 : index
    %c0_15 = arith.constant 0 : index
    %28 = vector.load %arg16[%c0_14, %c0_15] : memref<128x128xf32, #tpu.memory_space<vmem>>, vector<128x128xf32>
    %29 = vector.broadcast %18 : vector<128x1xf32> to vector<128x128xf32>
    %30 = arith.mulf %29, %28 : vector<128x128xf32>
    %31 = arith.truncf %21 : vector<128x128xf32> to vector<128x128xbf16>
    %cst_16 = arith.constant dense<0.000000e+00> : vector<128x128xf32>
    %32 = tpu.matmul %31, %10, %cst_16 {dimension_numbers = #tpu.dot_dimension_numbers<[1], [0], [0], [1], [0, 0, 1, 1], [], []>} : vector<128x128xbf16>, vector<128x128xbf16>, vector<128x128xf32> -> vector<128x128xf32>
    %33 = arith.addf %30, %32 : vector<128x128xf32>
    %c0_17 = arith.constant 0 : index
    %c0_18 = arith.constant 0 : index
    %34 = vector.load %arg16[%c0_17, %c0_18] : memref<128x128xf32, #tpu.memory_space<vmem>>, vector<128x128xf32>
    tpu.vector_store %arg16[%c0_17, %c0_18], %33 {strides = array<i32>} : memref<128x128xf32, #tpu.memory_space<vmem>>, vector<128x128xf32>,
    %c0_19 = arith.constant 0 : index
    %c0_20 = arith.constant 0 : index
    %35 = vector.load %arg14[%c0_19, %c0_20] : memref<128x1xf32, #tpu.memory_space<vmem>>, vector<128x1xf32>
    tpu.vector_store %arg14[%c0_19, %c0_20], %16 {strides = array<i32>} : memref<128x1xf32, #tpu.memory_space<vmem>>, vector<128x1xf32>,
    %c1_i32 = arith.constant 1 : i32
    %36 = arith.cmpi eq, %arg2, %c1_i32 : i32
    %37 = arith.extui %36 : i1 to i32
    %c0_i32_21 = arith.constant 0 : i32
    %38 = arith.cmpi ne, %37, %c0_i32_21 : i32
    scf.if %38 {
      %c0_22 = arith.constant 0 : index
      %c0_23 = arith.constant 0 : index
      %39 = vector.load %arg15[%c0_22, %c0_23] : memref<128x1xf32, #tpu.memory_space<vmem>>, vector<128x1xf32>
      %40 = tpu.reciprocal %39 {approx = true} : vector<128x1xf32> -> vector<128x1xf32>
      %41 = arith.mulf %39, %40 : vector<128x1xf32>
      %cst_24 = arith.constant 2.000000e+00 : f32
      %42 = vector.broadcast %cst_24 : f32 to vector<128x1xf32>
      %43 = arith.subf %42, %41 : vector<128x1xf32>
      %44 = arith.mulf %40, %43 : vector<128x1xf32>
      %c0_25 = arith.constant 0 : index
      %c0_26 = arith.constant 0 : index
      %45 = vector.load %arg16[%c0_25, %c0_26] : memref<128x128xf32, #tpu.memory_space<vmem>>, vector<128x128xf32>
      %46 = vector.broadcast %44 : vector<128x1xf32> to vector<128x128xf32>
      %47 = arith.mulf %45, %46 : vector<128x128xf32>
      %48 = arith.truncf %47 : vector<128x128xf32> to vector<128x128xbf16>
      %c0_27 = arith.constant 0 : index
      %c0_28 = arith.constant 0 : index
      %49 = vector.load %arg9[%c0_27, %c0_28] : memref<128x128xbf16, #tpu.memory_space<vmem>>, vector<128x128xbf16>
      %cst_29 = arith.constant dense<0.000000e+00> : vector<128x128xf32>
      %50 = tpu.matmul %48, %49, %cst_29 {dimension_numbers = #tpu.dot_dimension_numbers<[1], [0], [0], [1], [0, 0, 1, 1], [], []>} : vector<128x128xbf16>, vector<128x128xbf16>, vector<128x128xf32> -> vector<128x128xf32>
      %c0_30 = arith.constant 0 : index
      %c0_31 = arith.constant 0 : index
      %51 = vector.load %arg10[%c0_30, %c0_31] : memref<1x128xf32, #tpu.memory_space<vmem>>, vector<1x128xf32>
      %52 = vector.broadcast %51 : vector<1x128xf32> to vector<128x128xf32>
      %53 = arith.addf %50, %52 : vector<128x128xf32>
      %c0_32 = arith.constant 0 : index
      %c0_33 = arith.constant 0 : index
      %c0_34 = arith.constant 0 : index
      %54 = vector.load %arg3[%c0_32, %c0_33, %c0_34] : memref<1x128x128xf32, #tpu.memory_space<vmem>>, vector<1x128x128xf32>
      %55 = vector.shape_cast %54 : vector<1x128x128xf32> to vector<128x128xf32>
      %56 = arith.addf %53, %55 : vector<128x128xf32>
      %c0_35 = arith.constant 0 : index
      %c0_36 = arith.constant 0 : index
      %c0_37 = arith.constant 0 : index
      %57 = vector.load %arg11[%c0_35, %c0_36, %c0_37] : memref<1x128x128xf32, #tpu.memory_space<vmem>>, vector<1x128x128xf32>
      %58 = vector.shape_cast %57 : vector<1x128x128xf32> to vector<128x128xf32>
      %59 = vector.shape_cast %56 : vector<128x128xf32> to vector<1x128x128xf32>
      tpu.vector_store %arg11[%c0_35, %c0_36, %c0_37], %59 {strides = array<i32>} : memref<1x128x128xf32, #tpu.memory_space<vmem>>, vector<1x128x128xf32>,
    } else {
    }
    return
  }
  func.func @transform_0(%arg0: i32, %arg1: i32, %arg2: i32) -> (i32, i32, i32) {
    %c0_i32 = arith.constant 0 : i32
    %c0_i32_0 = arith.constant 0 : i32
    return %arg0, %arg1, %c0_i32 : i32, i32, i32
  }
  func.func @transform_1(%arg0: i32, %arg1: i32, %arg2: i32) -> (i32, i32, i32) {
    %c0_i32 = arith.constant 0 : i32
    %0 = arith.cmpi eq, %arg1, %c0_i32 : i32
    %c0_i32_0 = arith.constant 0 : i32
    %1 = arith.select %0, %arg2, %c0_i32_0 : i32
    %c0_i32_1 = arith.constant 0 : i32
    %c0_i32_2 = arith.constant 0 : i32
    return %arg0, %1, %c0_i32_1 : i32, i32, i32
  }
  func.func @transform_2(%arg0: i32, %arg1: i32, %arg2: i32) -> (i32, i32) {
    %c0_i32 = arith.constant 0 : i32
    %c0_i32_0 = arith.constant 0 : i32
    %c0_i32_1 = arith.constant 0 : i32
    return %c0_i32, %c0_i32_0 : i32, i32
  }
  func.func @transform_3(%arg0: i32, %arg1: i32, %arg2: i32) -> (i32, i32) {
    %c0_i32 = arith.constant 0 : i32
    %c0_i32_0 = arith.constant 0 : i32
    %c0_i32_1 = arith.constant 0 : i32
    return %c0_i32, %c0_i32_0 : i32, i32
  }
  func.func @transform_4(%arg0: i32, %arg1: i32, %arg2: i32) -> (i32, i32) {
    %c0_i32 = arith.constant 0 : i32
    %c0_i32_0 = arith.constant 0 : i32
    %c0_i32_1 = arith.constant 0 : i32
    return %c0_i32, %c0_i32_0 : i32, i32
  }
  func.func @transform_5(%arg0: i32, %arg1: i32, %arg2: i32) -> (i32, i32) {
    %c0_i32 = arith.constant 0 : i32
    %c0_i32_0 = arith.constant 0 : i32
    %c0_i32_1 = arith.constant 0 : i32
    return %c0_i32, %c0_i32_0 : i32, i32
  }
  func.func @transform_6(%arg0: i32, %arg1: i32, %arg2: i32) -> (i32, i32) {
    %c0_i32 = arith.constant 0 : i32
    %c0_i32_0 = arith.constant 0 : i32
    %c0_i32_1 = arith.constant 0 : i32
    return %c0_i32, %c0_i32_0 : i32, i32
  }
  func.func @transform_7(%arg0: i32, %arg1: i32, %arg2: i32) -> (i32, i32) {
    %c0_i32 = arith.constant 0 : i32
    %c0_i32_0 = arith.constant 0 : i32
    %c0_i32_1 = arith.constant 0 : i32
    return %c0_i32, %c0_i32_0 : i32, i32
  }
  func.func @transform_8(%arg0: i32, %arg1: i32, %arg2: i32) -> (i32, i32, i32) {
    %c0_i32 = arith.constant 0 : i32
    %c0_i32_0 = arith.constant 0 : i32
    return %arg0, %arg1, %c0_i32 : i32, i32, i32
  }
}

</mosaic_0001>

<bundles_post_ra>
// kernel: nonlocal_block_forward.1
= control target key start
LH: loop header
LB: loop body
LE: loop exit
PB: predicated region body
PF: predicated region fallthrough
CT: control target
= control target key end

     0   :  { %13 = vsyncpa [#allocation8], 0  ;;  %s3768_s0 = inlined_call_operand.vmem [shape: f32[2,256,128], index: 0, kind: input, shape index: {}, may-alias: {0,1}]   ;;  %s3769_s1 = inlined_call_operand.vmem [shape: f32[2,256,128], index: 1, kind: input, shape index: {}, may-alias: {0,1}]   ;;  %s3770_s2 = inlined_call_operand.vmem [shape: bf16[128,128], index: 2, kind: input, shape index: {}]   ;;  %s3771_s3 = inlined_call_operand.vmem [shape: f32[1,128], index: 3, kind: input, shape index: {}]   ;;  %s3772_s4 = inlined_call_operand.vmem [shape: bf16[128,256], index: 4, kind: input, shape index: {}]   ;;  %s3773_s5 = inlined_call_operand.vmem [shape: f32[1,256], index: 5, kind: input, shape index: {}]   ;;  %s3774_s6 = inlined_call_operand.vmem [shape: bf16[128,128], index: 6, kind: input, shape index: {}]   ;;  %s3775_s7 = inlined_call_operand.vmem [shape: f32[1,128], index: 7, kind: input, shape index: {}]   ;;  %s3776_s8 = inlined_call_operand.hbm [shape: f32[2,256,128], index: 8, kind: output, shape index: {}]  }
   0x1   :  { %15 = vsyncpa [#allocation8 + $0x1], 0  ;;  %s2910_s27 = smov 0   ;;  %s2912_s28 = smov 0  }
   0x2   :  { %s2914_s29 = smov 0   ;;  %s2916_s30 = smov 0  }
   0x3   :  { %s2918_s9 = smov 0   ;;  %s2920_s10 = smov 0  }
   0x4   :  { %s2922_s11 = smov 0   ;;  %s2924_s12 = smov 0  }
   0x5   :  { %s2926_s13 = smov 0   ;;  %s2928_s14 = smov 0  }
   0x6 LB: > { %3788 = sst [smem:[#allocation10_spill]] %s2819_s27  ;;  %s2210_s15 = sadd.s32 4294967295, %s2855_s14   ;;  %s2855_s14 = sphi %s2928_s14, %s21_s14   ;;  %s2851_s13 = sphi %s2926_s13, %s3812_s13   ;;  %s2847_s12 = sphi %s2924_s12, %s3811_s12   ;;  %s2843_s11 = sphi %s2922_s11, %s3810_s11   ;;  %s2839_s10 = sphi %s2920_s10, %s3809_s10   ;;  %s2835_s9 = sphi %s2918_s9, %s3808_s9   ;;  %s2831_s30 = sphi %s2916_s30, %s3807_s30   ;;  %s2827_s29 = sphi %s2914_s29, %s3806_s29   ;;  %s2823_s28 = sphi %s2912_s28, %s3814_s28   ;;  %s2819_s27 = sphi %s2910_s27, %s3813_s27  }
   0x7   : > { %3789 = sst [smem:[#allocation11_spill]] %s2827_s29  ;;  %s2211_s16 = sadd.s32 4294967294, %s2855_s14  }
   0x8   : > { %3790 = sst [smem:[#allocation12_spill]] %s2843_s11  ;;  %s33_s17 = sadd.s32 1, %s2843_s11 }
   0x9   : > { %3791 = sst [smem:[#allocation13_spill]] %s2847_s12  ;;  %p34_p0 = scmp.ge.s32.totalorder %s33_s17, 2 }
   0xa   : > { %3792 = sst [smem:[#allocation14_spill]] %s2851_s13  ;;  %s36_s18 = sadd.s32 1, %s2847_s12 }
   0xb   : > { %3793 = sst [smem:[#allocation15_spill]] %s2855_s14  ;;  %s40_s19 = sadd.s32 1, %s2851_s13 }
   0xc   : > { %p245_p1 = scmp.ne.s32.totalorder %s2827_s29, %s2823_s28  ;;  %s3816_s17 = smov (%p34_p0, %s33_s17), 0 }
   0xd   : > { %3794 = sst [smem:[#allocation16_spill]] %s3816_s17  ;;  %s3818_s18 = smov (!%p34_p0, %s36_s18), %s2847_s12 }
   0xe   : > { %p246_p2 = scmp.eq.s32.totalorder %s2210_s15, 7  ;;  %p251_p3 = scmp.ne.s32.totalorder %s2823_s28, %s2819_s27 }
   0xf   : > { %p38_p4 = scmp.ge.s32.totalorder %s3818_s18, 2  ;;  %p252_p5 = scmp.eq.s32.totalorder %s2211_s16, 7 }
  0x10   : > { %p2972_p6 = por %p246_p2, %p245_p1  ;;  %p2214_p8 = scmp.ge.s32.totalorder %s2855_s14, 1 }
  0x11   : > { %s3820_s18 = smov (%p38_p4, %s3818_s18), 0  ;;  %s3822_s19 = smov (!%p38_p4, %s40_s19), %s2851_s13 }
  0x12   : > { %3796 = sst [smem:[#allocation17_spill]] %s3820_s18  ;;  %p2979_p7 = por %p252_p5, %p251_p3 }
  0x13   : > { %p42_p9 = scmp.ge.s32.totalorder %s3822_s19, 2  ;;  %p318_p10 = scmp.lt.s32.totalorder %s2855_s14, 9 }
  0x14   : > { %s3797_s21 = scalar_select %p2979_p7, 1, 0 }
  0x15   : > { %s231_s22 = ssub.s32 %s2847_s12, %s3820_s18  ;;  %s3824_s19 = smov (%p42_p9, %s3822_s19), 0 }
  0x16   : > { %3798 = sst [smem:[#allocation18_spill]] %s3797_s21  ;;  %p319_p11 = pnand %p2214_p8, %p318_p10 }
  0x17   : > { %3799 = sst [smem:[#allocation19_spill]] %s3824_s19  ;;  %s230_s23 = ssub.s32 %s2851_s13, %s3824_s19 }
  0x18   : > { %s232_s24 = sor.u32 %s231_s22, %s230_s23  ;;  %s235_s25 = sadd.s32 1, %s2827_s29 }
  0x19   : > { %p233_p12 = scmp.eq.s32.totalorder %s232_s24, 0  ;;  %322 = sbr.rel (%p319_p11) target bundleno = 1802 (0x70a), region = 52 }
  0x1a   : > { %s3784_s15 = sand.u32 (!%p319_p11), 1, %s2823_s28   ;;  %s2997_s16 = sshll.u32 (!%p319_p11), %s2835_s9, 4 }
  0x1b   : > { %s2993_s26 = scalar_select %p233_p12, %s2827_s29, %s235_s25  }
  0x1c   : > { %s2215_s19 = sshll.u32 (!%p319_p11), %s3784_s15, 7  ;;  %p368_p13 = scmp.lt.s32.totalorder (!%p319_p11), %s2839_s10, 1 }
  0x1d   : > { %3800 = sst [smem:[#allocation20_spill]] %s2993_s26  ;;  %p370_p0 = scmp.lt.s32.totalorder (!%p319_p11), %s2997_s16, 31 }
  0x1e   : > { %p377_p1 = scmp.eq.s32.totalorder (!%p319_p11), %s2835_s9, 0  ;;  %p2222_p3 = scmp.ne.s32.totalorder (!%p319_p11), %s2831_s30, 0 }
  0x20   : > { %s369_s22 = scalar_select %p368_p13, %s2839_s10, 1 }
  0x21   : > { %s371_s23 = scalar_select %p370_p0, %s2997_s16, 31 }
  0x22   : > { %s2217_s24 = sshll.u32 %s369_s22, 5  ;;  %s3017_s22 = scalar_lea.vmem [#allocation7], %s2215_s19  ;;  %v2605_v0 = vld [vmem:[%s3770_s2] sm:$0xff] (!%p2222_p3)   ;;  %v2606_v1 = vld [vmem:[%s3770_s2 + $0x8] sm:$0xff] (!%p2222_p3)   ;;  %v2607_v2 = vld [vmem:[%s3770_s2 + $0x10] sm:$0xff] (!%p2222_p3)   ;;  %vm605_vm0 = vcmask (!%p2222_p3), 7168  }
  0x23   : > { %s373_s25 = sadd.s32 %s2217_s24, %s371_s23  ;;  %2335 = vmatprep.subr.bf16.mxu0 (!%p2222_p3), %v2605_v0  ;;  %2463 = vmatprep.subr.bf16.mxu1 (!%p2222_p3), %v2605_v0  ;;  %v2608_v3 = vld [vmem:[%s3770_s2 + $0x18] sm:$0xff] (!%p2222_p3)   ;;  %v2609_v10 = vld [vmem:[%s3770_s2 + $0x20] sm:$0xff] (!%p2222_p3)   ;;  %v2610_v11 = vld [vmem:[%s3770_s2 + $0x28] sm:$0xff] (!%p2222_p3)   ;;  %v2857_v32 = vmov (!%p2222_p3), -inf   ;;  %v2858_v33 = vmov (!%p2222_p3), 0.0  }
  0x24   : > { %s2218_s18 = sshll.u32 %s373_s25, 3  ;;  %2336 = vmatpush3.bf16.msra.mxu0 (!%p2222_p3), %v2605_v0  ;;  %2471 = vmatpush3.bf16.msra.mxu1 (!%p2222_p3), %v2605_v0  ;;  %v2611_v12 = vld [vmem:[%s3770_s2 + $0x30] sm:$0xff] (!%p2222_p3)   ;;  %v2612_v13 = vld [vmem:[%s3770_s2 + $0x38] sm:$0xff] (!%p2222_p3)   ;;  %606 = vst.msk [vmem:[#allocation4] sm:$0xff] (!%p2222_p3), %vm605_vm0, %v2857_v32  ;;  %607 = vst.msk [vmem:[#allocation4 + $0x8] sm:$0xff] (!%p2222_p3), %vm605_vm0, %v2857_v32 }
  0x25   : > { %s3009_s12 = scalar_lea.vmem %s3768_s0, %s2218_s18  ;;  %2337 = vmatprep.subr.bf16.mxu0 (!%p2222_p3), %v2606_v1  ;;  %2464 = vmatprep.subr.bf16.mxu1 (!%p2222_p3), %v2606_v1  ;;  %608 = vst.msk [vmem:[#allocation4 + $0x10] sm:$0xff] (!%p2222_p3), %vm605_vm0, %v2857_v32  ;;  %609 = vst.msk [vmem:[#allocation4 + $0x18] sm:$0xff] (!%p2222_p3), %vm605_vm0, %v2857_v32  ;;  %v2223_v35 = vld [vmem:[%s3771_s3] ss:$0 sm:$0xff] (!%p2222_p3) }
  0x26   : > { %s378_s11 = scalar_select %p377_p1, %s2831_s30, 0 }
  0x27   : > { %v397_v4 = vld [vmem:[%s3009_s12] sm:$0xff] (!%p2222_p3)  ;;  %v398_v5 = vld [vmem:[%s3009_s12 + $0x8] sm:$0xff] (!%p2222_p3)  ;;  %v399_v14 = vld [vmem:[%s3009_s12 + $0x10] sm:$0xff] (!%p2222_p3)  ;;  %610 = vst.msk [vmem:[#allocation4 + $0x20] sm:$0xff] (!%p2222_p3), %vm605_vm0, %v2857_v32 }
  0x28   : > { %s2219_s26 = sshll.u32 %s378_s11, 4  ;;  %396 = sbr.rel (%p2222_p3) target bundleno = 295 (0x127), region = 56  ;;  %2338 = vmatpush3.bf16.msra.mxu0 (!%p2222_p3), %v2606_v1  ;;  %2472 = vmatpush3.bf16.msra.mxu1 (!%p2222_p3), %v2606_v1  ;;  %v405_v6 = vld [vmem:[%s3009_s12 + $0x40] sm:$0xff] (!%p2222_p3)  ;;  %v413_v7 = vpack.c.bf16 (!%p2222_p3), %v398_v5, %v397_v4  ;;  %v406_v8 = vld [vmem:[%s3009_s12 + $0x48] sm:$0xff] (!%p2222_p3)  ;;  %v400_v15 = vld [vmem:[%s3009_s12 + $0x18] sm:$0xff] (!%p2222_p3)  ;;  %611 = vst.msk [vmem:[#allocation4 + $0x28] sm:$0xff] (!%p2222_p3), %vm605_vm0, %v2857_v32 }
  0x29   : > { %p382_p2 = scmp.lt.s32.totalorder %s2219_s26, 31  ;;  %2339 = vmatprep.subr.bf16.mxu0 (!%p2222_p3), %v2607_v2  ;;  %2465 = vmatprep.subr.bf16.mxu1 (!%p2222_p3), %v2607_v2  ;;  %v417_v9 = vpack.c.bf16 (!%p2222_p3), %v406_v8, %v405_v6  ;;  %v407_v16 = vld [vmem:[%s3009_s12 + $0x50] sm:$0xff] (!%p2222_p3)  ;;  %v408_v17 = vld [vmem:[%s3009_s12 + $0x58] sm:$0xff] (!%p2222_p3)  ;;  %v401_v18 = vld [vmem:[%s3009_s12 + $0x20] sm:$0xff] (!%p2222_p3)  ;;  %v414_v22 = vpack.c.bf16 (!%p2222_p3), %v400_v15, %v399_v14  ;;  %612 = vst.msk [vmem:[#allocation4 + $0x30] sm:$0xff] (!%p2222_p3), %vm605_vm0, %v2857_v32 }
  0x2a   : > { %2351 = vmatprep.mubr.bf16.mxu0 (!%p2222_p3), %v413_v7  ;;  %v402_v19 = vld [vmem:[%s3009_s12 + $0x28] sm:$0xff] (!%p2222_p3)  ;;  %v409_v20 = vld [vmem:[%s3009_s12 + $0x60] sm:$0xff] (!%p2222_p3)  ;;  %v418_v23 = vpack.c.bf16 (!%p2222_p3), %v408_v17, %v407_v16  ;;  %v403_v26 = vld [vmem:[%s3009_s12 + $0x30] sm:$0xff] (!%p2222_p3)  ;;  %613 = vst.msk [vmem:[#allocation4 + $0x38] sm:$0xff] (!%p2222_p3), %vm605_vm0, %v2857_v32 }
  0x2b   : > { %s3826_s26 = smov (!%p382_p2, %s2219_s26), 31  ;;  %2359 = vmatprep.mubr.bf16.mxu1 (!%p2222_p3), %v417_v9  ;;  %v410_v21 = vld [vmem:[%s3009_s12 + $0x68] sm:$0xff] (!%p2222_p3)  ;;  %v415_v24 = vpack.c.bf16 (!%p2222_p3), %v402_v19, %v401_v18  ;;  %v404_v27 = vld [vmem:[%s3009_s12 + $0x38] sm:$0xff] (!%p2222_p3)  ;;  %v411_v28 = vld [vmem:[%s3009_s12 + $0x70] sm:$0xff] (!%p2222_p3)  ;;  %614 = vst.msk [vmem:[#allocation4 + $0x40] sm:$0xff] (!%p2222_p3), %vm605_vm0, %v2857_v32 }
  0x2c   : > { %s385_s29 = sadd.s32 %s2217_s24, %s3826_s26  ;;  %2340 = vmatpush3.bf16.msra.mxu0 (!%p2222_p3), %v2607_v2  ;;  %2473 = vmatpush3.bf16.msra.mxu1 (!%p2222_p3), %v2607_v2  ;;  %v419_v25 = vpack.c.bf16 (!%p2222_p3), %v410_v21, %v409_v20  ;;  %v412_v29 = vld [vmem:[%s3009_s12 + $0x78] sm:$0xff] (!%p2222_p3)  ;;  %v416_v30 = vpack.c.bf16 (!%p2222_p3), %v404_v27, %v403_v26  ;;  %615 = vst.msk [vmem:[#allocation4 + $0x48] sm:$0xff] (!%p2222_p3), %vm605_vm0, %v2857_v32  ;;  %616 = vst.msk [vmem:[#allocation4 + $0x50] sm:$0xff] (!%p2222_p3), %vm605_vm0, %v2857_v32 }
  0x2d   : > { %s2221_s21 = sshll.u32 %s385_s29, 3  ;;  %2341 = vmatprep.subr.bf16.mxu0 (!%p2222_p3), %v2608_v3  ;;  %2466 = vmatprep.subr.bf16.mxu1 (!%p2222_p3), %v2608_v3  ;;  %v420_v31 = vpack.c.bf16 (!%p2222_p3), %v412_v29, %v411_v28  ;;  %617 = vst.msk [vmem:[#allocation4 + $0x58] sm:$0xff] (!%p2222_p3), %vm605_vm0, %v2857_v32  ;;  %618 = vst.msk [vmem:[#allocation4 + $0x60] sm:$0xff] (!%p2222_p3), %vm605_vm0, %v2857_v32 }
  0x2e   : > { %s3015_s14 = scalar_lea.vmem %s3769_s1, %s2221_s21  ;;  %619 = vst.msk [vmem:[#allocation4 + $0x68] sm:$0xff] (!%p2222_p3), %vm605_vm0, %v2857_v32  ;;  %620 = vst.msk [vmem:[#allocation4 + $0x70] sm:$0xff] (!%p2222_p3), %vm605_vm0, %v2857_v32 }
  0x2f   : > { %621 = vst.msk [vmem:[#allocation4 + $0x78] sm:$0xff] %vm605_vm0, %v2857_v32  ;;  %622 = vst.msk [vmem:[#allocation5] sm:$0xff] %vm605_vm0, %v2858_v33 }
  0x30   : > { %2342 = vmatpush3.bf16.msra.mxu0 %v2608_v3  ;;  %2474 = vmatpush3.bf16.msra.mxu1 %v2608_v3  ;;  %623 = vst.msk [vmem:[#allocation5 + $0x8] sm:$0xff] %vm605_vm0, %v2858_v33  ;;  %624 = vst.msk [vmem:[#allocation5 + $0x10] sm:$0xff] %vm605_vm0, %v2858_v33 }
  0x31   : > { %2343 = vmatprep.subr.bf16.mxu0 %v2609_v10  ;;  %2467 = vmatprep.subr.bf16.mxu1 %v2609_v10  ;;  %625 = vst.msk [vmem:[#allocation5 + $0x18] sm:$0xff] %vm605_vm0, %v2858_v33  ;;  %626 = vst.msk [vmem:[#allocation5 + $0x20] sm:$0xff] %vm605_vm0, %v2858_v33 }
  0x32   : > { %627 = vst.msk [vmem:[#allocation5 + $0x28] sm:$0xff] %vm605_vm0, %v2858_v33  ;;  %628 = vst.msk [vmem:[#allocation5 + $0x30] sm:$0xff] %vm605_vm0, %v2858_v33 }
  0x33   : > { %629 = vst.msk [vmem:[#allocation5 + $0x38] sm:$0xff] %vm605_vm0, %v2858_v33  ;;  %630 = vst.msk [vmem:[#allocation5 + $0x40] sm:$0xff] %vm605_vm0, %v2858_v33 }
  0x34   : > { %2344 = vmatpush3.bf16.msra.mxu0 %v2609_v10  ;;  %2475 = vmatpush3.bf16.msra.mxu1 %v2609_v10  ;;  %631 = vst.msk [vmem:[#allocation5 + $0x48] sm:$0xff] %vm605_vm0, %v2858_v33  ;;  %632 = vst.msk [vmem:[#allocation5 + $0x50] sm:$0xff] %vm605_vm0, %v2858_v33 }
  0x35   : > { %2345 = vmatprep.subr.bf16.mxu0 %v2610_v11  ;;  %2468 = vmatprep.subr.bf16.mxu1 %v2610_v11  ;;  %633 = vst.msk [vmem:[#allocation5 + $0x58] sm:$0xff] %vm605_vm0, %v2858_v33  ;;  %634 = vst.msk [vmem:[#allocation5 + $0x60] sm:$0xff] %vm605_vm0, %v2858_v33 }
  0x36   : > { %635 = vst.msk [vmem:[#allocation5 + $0x68] sm:$0xff] %vm605_vm0, %v2858_v33  ;;  %636 = vst.msk [vmem:[#allocation5 + $0x70] sm:$0xff] %vm605_vm0, %v2858_v33 }
  0x37   : > { %637 = vst.msk [vmem:[#allocation5 + $0x78] sm:$0xff] %vm605_vm0, %v2858_v33  ;;  %638 = vst [vmem:[#allocation6] sm:$0xff] %v2858_v33 }
  0x38   : > { %2346 = vmatpush3.bf16.msra.mxu0 %v2610_v11  ;;  %2476 = vmatpush3.bf16.msra.mxu1 %v2610_v11  ;;  %639 = vst [vmem:[#allocation6 + $0x8] sm:$0xff] %v2858_v33  ;;  %640 = vst [vmem:[#allocation6 + $0x10] sm:$0xff] %v2858_v33 }
  0x39   : > { %2347 = vmatprep.subr.bf16.mxu0 %v2611_v12  ;;  %2469 = vmatprep.subr.bf16.mxu1 %v2611_v12  ;;  %641 = vst [vmem:[#allocation6 + $0x18] sm:$0xff] %v2858_v33  ;;  %642 = vst [vmem:[#allocation6 + $0x20] sm:$0xff] %v2858_v33 }
  0x3a   : > { %643 = vst [vmem:[#allocation6 + $0x28] sm:$0xff] %v2858_v33  ;;  %644 = vst [vmem:[#allocation6 + $0x30] sm:$0xff] %v2858_v33 }
  0x3b   : > { %645 = vst [vmem:[#allocation6 + $0x38] sm:$0xff] %v2858_v33  ;;  %646 = vst [vmem:[#allocation6 + $0x40] sm:$0xff] %v2858_v33 }
  0x3c   : > { %2348 = vmatpush3.bf16.msra.mxu0 %v2611_v12  ;;  %2477 = vmatpush3.bf16.msra.mxu1 %v2611_v12  ;;  %647 = vst [vmem:[#allocation6 + $0x48] sm:$0xff] %v2858_v33  ;;  %648 = vst [vmem:[#allocation6 + $0x50] sm:$0xff] %v2858_v33 }
  0x3d   : > { %2349 = vmatprep.subr.bf16.mxu0 %v2612_v13  ;;  %2470 = vmatprep.subr.bf16.mxu1 %v2612_v13  ;;  %649 = vst [vmem:[#allocation6 + $0x58] sm:$0xff] %v2858_v33  ;;  %650 = vst [vmem:[#allocation6 + $0x60] sm:$0xff] %v2858_v33 }
  0x3e   : > { %651 = vst [vmem:[#allocation6 + $0x68] sm:$0xff] %v2858_v33  ;;  %652 = vst [vmem:[#allocation6 + $0x70] sm:$0xff] %v2858_v33 }
  0x3f   : > { %653 = vst [vmem:[#allocation6 + $0x78] sm:$0xff] %v2858_v33 }
  0x40   : > { %2350 = vmatpush3.bf16.msra.mxu0 %v2612_v13  ;;  %2478 = vmatpush3.bf16.msra.mxu1 %v2612_v13 }
  0x43   : > { %2352 = vmatmul.mubr.bf16.vlgmr.msra.gmra.mrb[0].mxu0 %v414_v22  ;;  %2360 = vmatmul.mubr.bf16.vlgmr.msra.gmra.mrb[0].mxu1 %v418_v23 }
  0x44   : > { %2355 = vmatprep.mubr.bf16.mxu0 %v415_v24  ;;  %2363 = vmatprep.mubr.bf16.mxu1 %v419_v25 }
  0x4b   : > { %2356 = vmatmul.mubr.bf16.gmra.mrb[4].mxu0 %v416_v30  ;;  %2364 = vmatmul.mubr.bf16.gmra.mrb[4].mxu1 %v420_v31 }
 0x116   : > { %v2353_v34 = vpop.f32.mrb[0].mxu0  ;;  %v2361_v36 = vpop.f32.mrb[0].mxu1 }
 0x117   : > { %v526_v37 = vpop.f32.mrb[1].mxu0  ;;  %v558_v38 = vpop.f32.mrb[1].mxu1  ;;  %v535_v41 = vadd.f32 %v2353_v34, %v2223_v35  ;;  %v567_v42 = vadd.f32 %v2361_v36, %v2223_v35 }
 0x118   : > { %v2354_v39 = vpop.f32.mrb[2].mxu0  ;;  %v2362_v40 = vpop.f32.mrb[2].mxu1  ;;  %v527_v47 = vadd.f32 %v2223_v35, %v526_v37  ;;  %v559_v48 = vadd.f32 %v2223_v35, %v558_v38 }
 0x119   : > { %v538_v43 = vadd.f32 %v2354_v39, %v2223_v35  ;;  %v570_v44 = vadd.f32 %v2362_v40, %v2223_v35  ;;  %v529_v45 = vpop.f32.mrb[3].mxu0  ;;  %v561_v46 = vpop.f32.mrb[3].mxu1 }
 0x11a   : > { %v530_v49 = vadd.f32 %v2223_v35, %v529_v45  ;;  %v562_v50 = vadd.f32 %v2223_v35, %v561_v46 }
 0x11b   : > { %v590_v51 = vpack.c.bf16 %v538_v43, %v535_v41  ;;  %v594_v52 = vpack.c.bf16 %v570_v44, %v567_v42 }
 0x11c   : > { %v589_v53 = vpack.c.bf16 %v530_v49, %v527_v47  ;;  %v593_v54 = vpack.c.bf16 %v562_v50, %v559_v48 }
 0x11d   : > { %598 = vst [vmem:[#allocation3 + $0x8] sm:$0xff] %v590_v51  ;;  %602 = vst [vmem:[#allocation3 + $0x28] sm:$0xff] %v594_v52 }
 0x11e   : > { %597 = vst [vmem:[#allocation3] sm:$0xff] %v589_v53  ;;  %601 = vst [vmem:[#allocation3 + $0x20] sm:$0xff] %v593_v54  ;;  %v2357_v55 = vpop.f32.mrb[4].mxu0  ;;  %v2365_v56 = vpop.f32.mrb[4].mxu1 }
 0x11f   : > { %v542_v57 = vpop.f32.mrb[5].mxu0  ;;  %v574_v58 = vpop.f32.mrb[5].mxu1  ;;  %v551_v61 = vadd.f32 %v2357_v55, %v2223_v35  ;;  %v583_v62 = vadd.f32 %v2365_v56, %v2223_v35 }
 0x120   : > { %v2358_v59 = vpop.f32.mrb[6].mxu0  ;;  %v2366_v60 = vpop.f32.mrb[6].mxu1  ;;  %v543_v3 = vadd.f32 %v2223_v35, %v542_v57  ;;  %v575_v4 = vadd.f32 %v2223_v35, %v574_v58 }
 0x121   : > { %v554_v63 = vadd.f32 %v2358_v59, %v2223_v35  ;;  %v586_v0 = vadd.f32 %v2366_v60, %v2223_v35  ;;  %v545_v1 = vpop.f32.mrb[7].mxu0  ;;  %v577_v2 = vpop.f32.mrb[7].mxu1 }
 0x122   : > { %v546_v5 = vadd.f32 %v2223_v35, %v545_v1  ;;  %v578_v6 = vadd.f32 %v2223_v35, %v577_v2 }
 0x123   : > { %v592_v7 = vpack.c.bf16 %v554_v63, %v551_v61  ;;  %v596_v8 = vpack.c.bf16 %v586_v0, %v583_v62 }
 0x124   : > { %v591_v9 = vpack.c.bf16 %v546_v5, %v543_v3  ;;  %v595_v10 = vpack.c.bf16 %v578_v6, %v575_v4 }
 0x125   : > { %600 = vst [vmem:[#allocation3 + $0x18] sm:$0xff] %v592_v7  ;;  %604 = vst [vmem:[#allocation3 + $0x38] sm:$0xff] %v596_v8 }
 0x126   : > { %599 = vst [vmem:[#allocation3 + $0x10] sm:$0xff] %v591_v9  ;;  %603 = vst [vmem:[#allocation3 + $0x30] sm:$0xff] %v595_v10 }
 0x127 PF: > { %p2232_p4 = scmp.ne.s32.totalorder %s2835_s9, 0 }
 0x128   : > { %v2613_v11 = vld [vmem:[%s3772_s4 + $0x4] ss:$8 sps:$4 sm:$0xff] (!%p2232_p4)   ;;  %v2615_v12 = vld [vmem:[%s3772_s4] ss:$8 sps:$4 sm:$0xff] (!%p2232_p4)   ;;  %v2859_v13 = vmov (!%p2232_p4), 0   ;;  %v660_v34 = vld [vmem:[%s3015_s14 + $0x10] sm:$0xff] (!%p2232_p4)  ;;  %v700_v52 = vlaneseq (!%p2232_p4) }
 0x129   : > { %657 = sbr.rel (%p2232_p4) target bundleno = 574 (0x23e), region = 60  ;;  %822 = vmatprep.mubr.bf16.mxu0 (!%p2232_p4), %v2859_v13  ;;  %862 = vmatprep.mubr.bf16.mxu1 (!%p2232_p4), %v2859_v13  ;;  %v2616_v14 = vld [vmem:[%s3772_s4 + $0x14] ss:$8 sps:$4 sm:$0xff] (!%p2232_p4)   ;;  %v2618_v15 = vld [vmem:[%s3772_s4 + $0x10] ss:$8 sps:$4 sm:$0xff] (!%p2232_p4)   ;;  %v658_v28 = vld [vmem:[%s3015_s14] sm:$0xff] (!%p2232_p4) }
 0x12a   : > { %790 = vmatprep.subr.bf16.mxu0 (!%p2232_p4), %v2613_v11  ;;  %2479 = vmatprep.subr.bf16.mxu1 (!%p2232_p4), %v2613_v11  ;;  %v2619_v16 = vld [vmem:[%s3772_s4 + $0x24] ss:$8 sps:$4 sm:$0xff] (!%p2232_p4)   ;;  %v2621_v17 = vld [vmem:[%s3772_s4 + $0x20] ss:$8 sps:$4 sm:$0xff] (!%p2232_p4)   ;;  %v2622_v18 = vld [vmem:[%s3772_s4 + $0x34] ss:$8 sps:$4 sm:$0xff] (!%p2232_p4)  }
 0x12b   : > { %791 = vmatpush1.bf16.msra.mxu0 (!%p2232_p4), %v2615_v12  ;;  %2487 = vmatpush1.bf16.msra.mxu1 (!%p2232_p4), %v2615_v12  ;;  %v2624_v19 = vld [vmem:[%s3772_s4 + $0x30] ss:$8 sps:$4 sm:$0xff] (!%p2232_p4)   ;;  %v2625_v20 = vld [vmem:[%s3772_s4 + $0x44] ss:$8 sps:$4 sm:$0xff] (!%p2232_p4)   ;;  %v2627_v21 = vld [vmem:[%s3772_s4 + $0x40] ss:$8 sps:$4 sm:$0xff] (!%p2232_p4)  }
 0x12c   : > { %792 = vmatprep.subr.bf16.mxu0 (!%p2232_p4), %v2616_v14  ;;  %2480 = vmatprep.subr.bf16.mxu1 (!%p2232_p4), %v2616_v14  ;;  %v2628_v22 = vld [vmem:[%s3772_s4 + $0x54] ss:$8 sps:$4 sm:$0xff] (!%p2232_p4)   ;;  %v2630_v23 = vld [vmem:[%s3772_s4 + $0x50] ss:$8 sps:$4 sm:$0xff] (!%p2232_p4)   ;;  %v2631_v24 = vld [vmem:[%s3772_s4 + $0x64] ss:$8 sps:$4 sm:$0xff] (!%p2232_p4)  }
 0x12d   : > { %v2633_v25 = vld [vmem:[%s3772_s4 + $0x60] ss:$8 sps:$4 sm:$0xff] (!%p2232_p4)   ;;  %v2634_v26 = vld [vmem:[%s3772_s4 + $0x74] ss:$8 sps:$4 sm:$0xff] (!%p2232_p4)   ;;  %v2636_v27 = vld [vmem:[%s3772_s4 + $0x70] ss:$8 sps:$4 sm:$0xff] (!%p2232_p4)  }
 0x12e   : > { %v659_v29 = vld [vmem:[%s3015_s14 + $0x8] sm:$0xff] (!%p2232_p4)  ;;  %v666_v30 = vld [vmem:[%s3015_s14 + $0x40] sm:$0xff] (!%p2232_p4)  ;;  %v661_v35 = vld [vmem:[%s3015_s14 + $0x18] sm:$0xff] (!%p2232_p4)  ;;  %v701_v53 = vshrl.u32 (!%p2232_p4), %v700_v52, 7 }
 0x12f   : > { %793 = vmatpush1.bf16.msra.mxu0 (!%p2232_p4), %v2618_v15  ;;  %2488 = vmatpush1.bf16.msra.mxu1 (!%p2232_p4), %v2618_v15  ;;  %v667_v31 = vld [vmem:[%s3015_s14 + $0x48] sm:$0xff] (!%p2232_p4)  ;;  %v674_v32 = vpack.c.bf16 (!%p2232_p4), %v659_v29, %v658_v28  ;;  %v668_v36 = vld [vmem:[%s3015_s14 + $0x50] sm:$0xff] (!%p2232_p4)  ;;  %v669_v37 = vld [vmem:[%s3015_s14 + $0x58] sm:$0xff] (!%p2232_p4)  ;;  %v675_v38 = vpack.c.bf16 (!%p2232_p4), %v661_v35, %v660_v34 }
 0x130   : > { %794 = vmatprep.subr.bf16.mxu0 %v2619_v16  ;;  %2481 = vmatprep.subr.bf16.mxu1 %v2619_v16  ;;  %v678_v33 = vpack.c.bf16 %v667_v31, %v666_v30  ;;  %v679_v39 = vpack.c.bf16 %v669_v37, %v668_v36  ;;  %v662_v40 = vld [vmem:[%s3015_s14 + $0x20] sm:$0xff]  ;;  %v663_v41 = vld [vmem:[%s3015_s14 + $0x28] sm:$0xff]  ;;  %v664_v46 = vld [vmem:[%s3015_s14 + $0x30] sm:$0xff]  ;;  %v702_v54 = vsub.s32 0, %v701_v53  ;;  %v706_v56 = vsub.s32 1, %v701_v53 }
 0x131   : > { %v670_v42 = vld [vmem:[%s3015_s14 + $0x60] sm:$0xff]  ;;  %v671_v43 = vld [vmem:[%s3015_s14 + $0x68] sm:$0xff]  ;;  %v676_v44 = vpack.c.bf16 %v663_v41, %v662_v40  ;;  %v665_v47 = vld [vmem:[%s3015_s14 + $0x38] sm:$0xff] }
 0x132   : > { %v680_v45 = vpack.c.bf16 %v671_v43, %v670_v42  ;;  %v672_v48 = vld [vmem:[%s3015_s14 + $0x70] sm:$0xff]  ;;  %v673_v49 = vld [vmem:[%s3015_s14 + $0x78] sm:$0xff]  ;;  %v677_v50 = vpack.c.bf16 %v665_v47, %v664_v46  ;;  %v698_v55 = vld [vmem:[%s3773_s5] sm:$0x3]  ;;  %s2269_s14 = sshll.u32 %s2831_s30, 7 }
 0x133   : > { %795 = vmatpush1.bf16.msra.mxu0 %v2621_v17  ;;  %2489 = vmatpush1.bf16.msra.mxu1 %v2621_v17  ;;  %v681_v51 = vpack.c.bf16 %v673_v49, %v672_v48  ;;  %v3171_v57 = vrot.slane %v698_v55, %v702_v54  ;;  %v3173_v60 = vrot.slane %v698_v55, %v706_v56  ;;  %s3184_s9 = scalar_lea.vmem [#allocation2], %s2269_s14 }
 0x134   : > { %796 = vmatprep.subr.bf16.mxu0 %v2622_v18  ;;  %2482 = vmatprep.subr.bf16.mxu1 %v2622_v18 }
 0x137   : > { %797 = vmatpush1.bf16.msra.mxu0 %v2624_v19  ;;  %2490 = vmatpush1.bf16.msra.mxu1 %v2624_v19 }
 0x138   : > { %798 = vmatprep.subr.bf16.mxu0 %v2625_v20  ;;  %2483 = vmatprep.subr.bf16.mxu1 %v2625_v20 }
 0x13b   : > { %799 = vmatpush1.bf16.msra.mxu0 %v2627_v21  ;;  %2491 = vmatpush1.bf16.msra.mxu1 %v2627_v21 }
 0x13c   : > { %800 = vmatprep.subr.bf16.mxu0 %v2628_v22  ;;  %2484 = vmatprep.subr.bf16.mxu1 %v2628_v22 }
 0x13f   : > { %801 = vmatpush1.bf16.msra.mxu0 %v2630_v23  ;;  %2492 = vmatpush1.bf16.msra.mxu1 %v2630_v23 }
 0x140   : > { %802 = vmatprep.subr.bf16.mxu0 %v2631_v24  ;;  %2485 = vmatprep.subr.bf16.mxu1 %v2631_v24 }
 0x143   : > { %803 = vmatpush1.bf16.msra.mxu0 %v2633_v25  ;;  %2493 = vmatpush1.bf16.msra.mxu1 %v2633_v25 }
 0x144   : > { %804 = vmatprep.subr.bf16.mxu0 %v2634_v26  ;;  %2486 = vmatprep.subr.bf16.mxu1 %v2634_v26 }
 0x147   : > { %805 = vmatpush1.bf16.msra.mxu0 %v2636_v27  ;;  %2494 = vmatpush1.bf16.msra.mxu1 %v2636_v27 }
 0x14a   : > { %823 = vmatmul.mubr.bf16.vlgmr.msra.gmra.mrb[0].mxu0 %v674_v32  ;;  %863 = vmatmul.mubr.bf16.vlgmr.msra.gmra.mrb[0].mxu1 %v678_v33 }
 0x14b   : > { %832 = vmatprep.mubr.bf16.mxu0 %v2859_v13  ;;  %872 = vmatprep.mubr.bf16.mxu1 %v2859_v13 }
 0x152   : > { %833 = vmatmul.mubr.bf16.gmra.mrb[4].mxu0 %v675_v38  ;;  %873 = vmatmul.mubr.bf16.gmra.mrb[4].mxu1 %v679_v39 }
 0x153   : > { %842 = vmatprep.mubr.bf16.mxu0 %v2859_v13  ;;  %882 = vmatprep.mubr.bf16.mxu1 %v2859_v13 }
 0x15a   : > { %843 = vmatmul.mubr.bf16.gmra.mrb[8].mxu0 %v676_v44  ;;  %883 = vmatmul.mubr.bf16.gmra.mrb[8].mxu1 %v680_v45 }
 0x15b   : > { %852 = vmatprep.mubr.bf16.mxu0 %v2859_v13  ;;  %892 = vmatprep.mubr.bf16.mxu1 %v2859_v13 }
 0x162   : > { %853 = vmatmul.mubr.bf16.gmra.mrb[12].mxu0 %v677_v50  ;;  %893 = vmatmul.mubr.bf16.gmra.mrb[12].mxu1 %v681_v51 }
 0x21d   : > { %v824_v58 = vpop.f32.mrb[0].mxu0  ;;  %v864_v59 = vpop.f32.mrb[0].mxu1 }
 0x21e   : > { %v826_v61 = vpop.f32.mrb[1].mxu0  ;;  %v866_v62 = vpop.f32.mrb[1].mxu1  ;;  %v825_v1 = vadd.f32 %v824_v58, %v3171_v57  ;;  %v865_v2 = vadd.f32 %v864_v59, %v3171_v57 }
 0x21f   : > { %v828_v63 = vpop.f32.mrb[2].mxu0  ;;  %v868_v0 = vpop.f32.mrb[2].mxu1  ;;  %v827_v7 = vadd.f32 %v826_v61, %v3173_v60  ;;  %v867_v8 = vadd.f32 %v866_v62, %v3173_v60 }
 0x220   : > { %v829_v3 = vadd.f32 %v828_v63, %v3171_v57  ;;  %v869_v4 = vadd.f32 %v868_v0, %v3171_v57  ;;  %v830_v5 = vpop.f32.mrb[3].mxu0  ;;  %v870_v6 = vpop.f32.mrb[3].mxu1 }
 0x221   : > { %v831_v9 = vadd.f32 %v830_v5, %v3173_v60  ;;  %v871_v10 = vadd.f32 %v870_v6, %v3173_v60 }
 0x222   : > { %v903_v11 = vpack.c.bf16 %v829_v3, %v825_v1  ;;  %v911_v12 = vpack.c.bf16 %v869_v4, %v865_v2 }
 0x223   : > { %v904_v13 = vpack.c.bf16 %v831_v9, %v827_v7  ;;  %v912_v14 = vpack.c.bf16 %v871_v10, %v867_v8 }
 0x224   : > { %922 = vst [vmem:[%s3184_s9] sm:$0xff] %v903_v11  ;;  %930 = vst [vmem:[%s3184_s9 + $0x40] sm:$0xff] %v911_v12 }
 0x225   : > { %923 = vst [vmem:[%s3184_s9 + $0x8] sm:$0xff] %v904_v13  ;;  %931 = vst [vmem:[%s3184_s9 + $0x48] sm:$0xff] %v912_v14  ;;  %v834_v15 = vpop.f32.mrb[4].mxu0  ;;  %v874_v16 = vpop.f32.mrb[4].mxu1 }
 0x226   : > { %v836_v17 = vpop.f32.mrb[5].mxu0  ;;  %v876_v18 = vpop.f32.mrb[5].mxu1  ;;  %v835_v21 = vadd.f32 %v834_v15, %v3171_v57  ;;  %v875_v22 = vadd.f32 %v874_v16, %v3171_v57 }
 0x227   : > { %v838_v19 = vpop.f32.mrb[6].mxu0  ;;  %v878_v20 = vpop.f32.mrb[6].mxu1  ;;  %v837_v27 = vadd.f32 %v836_v17, %v3173_v60  ;;  %v877_v28 = vadd.f32 %v876_v18, %v3173_v60 }
 0x228   : > { %v839_v23 = vadd.f32 %v838_v19, %v3171_v57  ;;  %v879_v24 = vadd.f32 %v878_v20, %v3171_v57  ;;  %v840_v25 = vpop.f32.mrb[7].mxu0  ;;  %v880_v26 = vpop.f32.mrb[7].mxu1 }
 0x229   : > { %v841_v29 = vadd.f32 %v840_v25, %v3173_v60  ;;  %v881_v30 = vadd.f32 %v880_v26, %v3173_v60 }
 0x22a   : > { %v905_v31 = vpack.c.bf16 %v839_v23, %v835_v21  ;;  %v913_v32 = vpack.c.bf16 %v879_v24, %v875_v22 }
 0x22b   : > { %v906_v33 = vpack.c.bf16 %v841_v29, %v837_v27  ;;  %v914_v34 = vpack.c.bf16 %v881_v30, %v877_v28 }
 0x22c   : > { %924 = vst [vmem:[%s3184_s9 + $0x10] sm:$0xff] %v905_v31  ;;  %932 = vst [vmem:[%s3184_s9 + $0x50] sm:$0xff] %v913_v32 }
 0x22d   : > { %925 = vst [vmem:[%s3184_s9 + $0x18] sm:$0xff] %v906_v33  ;;  %933 = vst [vmem:[%s3184_s9 + $0x58] sm:$0xff] %v914_v34  ;;  %v844_v35 = vpop.f32.mrb[8].mxu0  ;;  %v884_v36 = vpop.f32.mrb[8].mxu1 }
 0x22e   : > { %v846_v37 = vpop.f32.mrb[9].mxu0  ;;  %v886_v38 = vpop.f32.mrb[9].mxu1  ;;  %v845_v41 = vadd.f32 %v844_v35, %v3171_v57  ;;  %v885_v42 = vadd.f32 %v884_v36, %v3171_v57 }
 0x22f   : > { %v848_v39 = vpop.f32.mrb[10].mxu0  ;;  %v888_v40 = vpop.f32.mrb[10].mxu1  ;;  %v847_v47 = vadd.f32 %v846_v37, %v3173_v60  ;;  %v887_v48 = vadd.f32 %v886_v38, %v3173_v60 }
 0x230   : > { %v849_v43 = vadd.f32 %v848_v39, %v3171_v57  ;;  %v889_v44 = vadd.f32 %v888_v40, %v3171_v57  ;;  %v850_v45 = vpop.f32.mrb[11].mxu0  ;;  %v890_v46 = vpop.f32.mrb[11].mxu1 }
 0x231   : > { %v851_v49 = vadd.f32 %v850_v45, %v3173_v60  ;;  %v891_v50 = vadd.f32 %v890_v46, %v3173_v60 }
 0x232   : > { %v907_v51 = vpack.c.bf16 %v849_v43, %v845_v41  ;;  %v915_v52 = vpack.c.bf16 %v889_v44, %v885_v42 }
 0x233   : > { %v908_v53 = vpack.c.bf16 %v851_v49, %v847_v47  ;;  %v916_v54 = vpack.c.bf16 %v891_v50, %v887_v48 }
 0x234   : > { %926 = vst [vmem:[%s3184_s9 + $0x20] sm:$0xff] %v907_v51  ;;  %934 = vst [vmem:[%s3184_s9 + $0x60] sm:$0xff] %v915_v52 }
 0x235   : > { %927 = vst [vmem:[%s3184_s9 + $0x28] sm:$0xff] %v908_v53  ;;  %935 = vst [vmem:[%s3184_s9 + $0x68] sm:$0xff] %v916_v54  ;;  %v854_v55 = vpop.f32.mrb[12].mxu0  ;;  %v894_v56 = vpop.f32.mrb[12].mxu1 }
 0x236   : > { %v856_v58 = vpop.f32.mrb[13].mxu0  ;;  %v896_v59 = vpop.f32.mrb[13].mxu1  ;;  %v855_v63 = vadd.f32 %v854_v55, %v3171_v57  ;;  %v895_v0 = vadd.f32 %v894_v56, %v3171_v57 }
 0x237   : > { %v858_v61 = vpop.f32.mrb[14].mxu0  ;;  %v898_v62 = vpop.f32.mrb[14].mxu1  ;;  %v857_v5 = vadd.f32 %v856_v58, %v3173_v60  ;;  %v897_v6 = vadd.f32 %v896_v59, %v3173_v60 }
 0x238   : > { %v859_v1 = vadd.f32 %v858_v61, %v3171_v57  ;;  %v899_v2 = vadd.f32 %v898_v62, %v3171_v57  ;;  %v860_v3 = vpop.f32.mrb[15].mxu0  ;;  %v900_v4 = vpop.f32.mrb[15].mxu1 }
 0x239   : > { %v861_v7 = vadd.f32 %v860_v3, %v3173_v60  ;;  %v901_v8 = vadd.f32 %v900_v4, %v3173_v60 }
 0x23a   : > { %v909_v9 = vpack.c.bf16 %v859_v1, %v855_v63  ;;  %v917_v10 = vpack.c.bf16 %v899_v2, %v895_v0 }
 0x23b   : > { %v910_v11 = vpack.c.bf16 %v861_v7, %v857_v5  ;;  %v918_v12 = vpack.c.bf16 %v901_v8, %v897_v6 }
 0x23c   : > { %928 = vst [vmem:[%s3184_s9 + $0x30] sm:$0xff] %v909_v9  ;;  %936 = vst [vmem:[%s3184_s9 + $0x70] sm:$0xff] %v917_v10 }
 0x23d   : > { %929 = vst [vmem:[%s3184_s9 + $0x38] sm:$0xff] %v910_v11  ;;  %937 = vst [vmem:[%s3184_s9 + $0x78] sm:$0xff] %v918_v12 }
 0x23e PF: > { %s2270_s24 = sshll.u32 %s2831_s30, 7  ;;  %v957_v57 = vld [vmem:[#allocation3] sm:$0xff]  ;;  %v958_v20 = vld [vmem:[#allocation3 + $0x8] sm:$0xff]  ;;  %v959_v21 = vld [vmem:[#allocation3 + $0x10] sm:$0xff]  ;;  %v2860_v36 = vmov 0   ;;  %vm1382_vm1 = vcmask 7168  }
 0x23f   : > { %2383 = vmatprep.mubr.bf16.mxu0 %v957_v57  ;;  %s3227_s25 = scalar_lea.vmem [#allocation2], %s2270_s24  ;;  %v960_v22 = vld [vmem:[#allocation3 + $0x18] sm:$0xff]  ;;  %v961_v23 = vld [vmem:[#allocation3 + $0x20] sm:$0xff]  ;;  %v962_v24 = vld [vmem:[#allocation3 + $0x28] sm:$0xff]  ;;  %2638 = vset.pattern.permute.xlu1 %v2860_v36  ;;  %p2253_p5 = scmp.ne.s32.totalorder %s2831_s30, 1 }
 0x240   : > { %v963_v25 = vld [vmem:[#allocation3 + $0x30] sm:$0xff]  ;;  %v964_v26 = vld [vmem:[#allocation3 + $0x38] sm:$0xff]  ;;  %2637 = vset.pattern.permute.xlu0 %v2860_v36  ;;  %v3289_v47 = vld [vmem:[#allocation4] sm:$0xff] }
 0x241   : > { %v3287_v46 = vld [vmem:[#allocation4 + $0x10] sm:$0xff]  ;;  %v3297_v52 = vld [vmem:[#allocation4 + $0x18] sm:$0xff]  ;;  %v3302_v53 = vld [vmem:[#allocation4 + $0x8] sm:$0xff] }
 0x242   : > { %v3317_v61 = vld [vmem:[#allocation4 + $0x20] sm:$0xff]  ;;  %v3321_v62 = vld [vmem:[#allocation4 + $0x38] sm:$0xff]  ;;  %v3331_v4 = vld [vmem:[#allocation4 + $0x30] sm:$0xff] }
 0x243   : > { %v3335_v5 = vld [vmem:[#allocation4 + $0x28] sm:$0xff]  ;;  %v3346_v11 = vld [vmem:[#allocation4 + $0x40] sm:$0xff]  ;;  %v3351_v12 = vld [vmem:[#allocation4 + $0x58] sm:$0xff] }
 0x244   : > { %v941_v60 = vld [vmem:[%s3227_s25] sm:$0xff]  ;;  %v943_v13 = vld [vmem:[%s3227_s25 + $0x10] sm:$0xff]  ;;  %v942_v44 = vld [vmem:[%s3227_s25 + $0x8] sm:$0xff] }
 0x245   : > { %2367 = vmatprep.subr.bf16.mxu0 %v941_v60  ;;  %v945_v14 = vld [vmem:[%s3227_s25 + $0x20] sm:$0xff]  ;;  %v947_v15 = vld [vmem:[%s3227_s25 + $0x30] sm:$0xff]  ;;  %v944_v45 = vld [vmem:[%s3227_s25 + $0x18] sm:$0xff]  ;;  %2399 = vmatprep.subr.bf16.mxu1 %v942_v44 }
 0x246   : > { %2368 = vmatpush3.bf16.xpose.msra.mxu0 %v941_v60  ;;  %v949_v16 = vld [vmem:[%s3227_s25 + $0x40] sm:$0xff]  ;;  %v951_v17 = vld [vmem:[%s3227_s25 + $0x50] sm:$0xff]  ;;  %2400 = vmatpush3.bf16.msra.mxu1 %v942_v44  ;;  %v946_v55 = vld [vmem:[%s3227_s25 + $0x28] sm:$0xff] }
 0x247   : > { %2369 = vmatprep.subr.bf16.mxu0 %v943_v13  ;;  %v953_v18 = vld [vmem:[%s3227_s25 + $0x60] sm:$0xff]  ;;  %v955_v19 = vld [vmem:[%s3227_s25 + $0x70] sm:$0xff]  ;;  %2401 = vmatprep.subr.bf16.mxu1 %v944_v45  ;;  %v948_v63 = vld [vmem:[%s3227_s25 + $0x38] sm:$0xff] }
 0x248   : > { %v950_v6 = vld [vmem:[%s3227_s25 + $0x48] sm:$0xff]  ;;  %v952_v57 = vld [vmem:[%s3227_s25 + $0x58] sm:$0xff] }
 0x24a   : > { %2402 = vmatpush3.bf16.msra.mxu1 %v944_v45 }
 0x24b   : > { %2403 = vmatprep.subr.bf16.mxu1 %v946_v55 }
 0x24e   : > { %2370 = vmatpush3.bf16.xpose.msra.mxu0 %v943_v13  ;;  %2404 = vmatpush3.bf16.msra.mxu1 %v946_v55 }
 0x24f   : > { %2371 = vmatprep.subr.bf16.mxu0 %v945_v14  ;;  %2405 = vmatprep.subr.bf16.mxu1 %v948_v63 }
 0x252   : > { %2406 = vmatpush3.bf16.msra.mxu1 %v948_v63 }
 0x253   : > { %2407 = vmatprep.subr.bf16.mxu1 %v950_v6 }
 0x256   : > { %2372 = vmatpush3.bf16.xpose.msra.mxu0 %v945_v14  ;;  %2408 = vmatpush3.bf16.msra.mxu1 %v950_v6 }
 0x257   : > { %2373 = vmatprep.subr.bf16.mxu0 %v947_v15  ;;  %2409 = vmatprep.subr.bf16.mxu1 %v952_v57 }
 0x25a   : > { %2410 = vmatpush3.bf16.msra.mxu1 %v952_v57 }
 0x25e   : > { %2374 = vmatpush3.bf16.xpose.msra.mxu0 %v947_v15 }
 0x25f   : > { %2375 = vmatprep.subr.bf16.mxu0 %v949_v16 }
 0x266   : > { %2376 = vmatpush3.bf16.xpose.msra.mxu0 %v949_v16  ;;  %v3362_v16 = vld [vmem:[#allocation4 + $0x50] sm:$0xff] }
 0x267   : > { %2377 = vmatprep.subr.bf16.mxu0 %v951_v17 }
 0x26e   : > { %2378 = vmatpush3.bf16.xpose.msra.mxu0 %v951_v17  ;;  %v3367_v17 = vld [vmem:[#allocation4 + $0x48] sm:$0xff] }
 0x26f   : > { %2379 = vmatprep.subr.bf16.mxu0 %v953_v18 }
 0x276   : > { %2380 = vmatpush3.bf16.xpose.msra.mxu0 %v953_v18  ;;  %v954_v18 = vld [vmem:[%s3227_s25 + $0x68] sm:$0xff] }
 0x277   : > { %2381 = vmatprep.subr.bf16.mxu0 %v955_v19  ;;  %2411 = vmatprep.subr.bf16.mxu1 %v954_v18 }
 0x278   : > { %2412 = vmatpush3.bf16.msra.mxu1 %v954_v18 }
 0x27e   : > { %2382 = vmatpush3.bf16.xpose.msra.mxu0 %v955_v19 }
 0x285   : > { %2384 = vmatmul.mubr.bf16.vlgmr.msra.gmra.mrb[0].mxu0 %v958_v20 }
 0x286   : > { %2387 = vmatprep.mubr.bf16.mxu0 %v959_v21 }
 0x28d   : > { %2388 = vmatmul.mubr.bf16.gmra.mrb[4].mxu0 %v960_v22 }
 0x28e   : > { %2391 = vmatprep.mubr.bf16.mxu0 %v961_v23 }
 0x295   : > { %2392 = vmatmul.mubr.bf16.gmra.mrb[8].mxu0 %v962_v24  ;;  %v3380_v24 = vld [vmem:[#allocation4 + $0x60] sm:$0xff] }
 0x296   : > { %2395 = vmatprep.mubr.bf16.mxu0 %v963_v25  ;;  %v3385_v25 = vld [vmem:[#allocation4 + $0x78] sm:$0xff] }
 0x29d   : > { %2396 = vmatmul.mubr.bf16.gmra.mrb[12].mxu0 %v964_v26  ;;  %v956_v26 = vld [vmem:[%s3227_s25 + $0x78] sm:$0xff] }
 0x29e   : > { %2413 = vmatprep.subr.bf16.mxu1 %v956_v26 }
 0x29f   : > { %2414 = vmatpush3.bf16.msra.mxu1 %v956_v26 }
 0x358   : > { %v3237_v27 = vpop.f32.mrb[0].mxu0 }
 0x359   : > { %1082 = vmax.xlane.f32.xlu1 %v3237_v27  ;;  %v3240_v28 = vpop.f32.mrb[1].mxu0 }
 0x35a   : > { %1078 = vmax.xlane.f32.xlu0 %v3240_v28  ;;  %v3243_v29 = vpop.f32.mrb[2].mxu0 }
 0x35b   : > { %v3245_v30 = vpop.f32.mrb[3].mxu0 }
 0x35d   : > { %1084 = vmax.xlane.f32.xlu1 %v3243_v29 }
 0x35e   : > { %1080 = vmax.xlane.f32.xlu0 %v3245_v30 }
 0x360   : > { %v3249_v31 = vpop.f32.mrb[4].mxu0 }
 0x361   : > { %v3251_v32 = vpop.f32.mrb[5].mxu0 }
 0x362   : > { %1086 = vmax.xlane.f32.xlu0 %v3251_v32  ;;  %v3254_v33 = vpop.f32.mrb[6].mxu0 }
 0x363   : > { %1092 = vmax.xlane.f32.xlu1 %v3254_v33  ;;  %v3257_v34 = vpop.f32.mrb[7].mxu0 }
 0x366   : > { %1090 = vmax.xlane.f32.xlu0 %v3249_v31 }
 0x367   : > { %1088 = vmax.xlane.f32.xlu1 %v3257_v34 }
 0x368   : > { %v3261_v35 = vpop.f32.mrb[8].mxu0 }
 0x369   : > { %v3263_v37 = vpop.f32.mrb[9].mxu0 }
 0x36a   : > { %v3265_v38 = vpop.f32.mrb[10].mxu0  ;;  %1094 = vmax.xlane.f32.xlu0 %v3263_v37 }
 0x36b   : > { %1100 = vmax.xlane.f32.xlu1 %v3265_v38  ;;  %v3269_v39 = vpop.f32.mrb[11].mxu0 }
 0x36e   : > { %1098 = vmax.xlane.f32.xlu0 %v3261_v35 }
 0x36f   : > { %1096 = vmax.xlane.f32.xlu1 %v3269_v39 }
 0x370   : > { %v3273_v40 = vpop.f32.mrb[12].mxu0 }
 0x371   : > { %v3275_v41 = vpop.f32.mrb[13].mxu0 }
 0x372   : > { %v3277_v42 = vpop.f32.mrb[14].mxu0  ;;  %1102 = vmax.xlane.f32.xlu0 %v3275_v41 }
 0x373   : > { %1108 = vmax.xlane.f32.xlu1 %v3277_v42  ;;  %v3281_v43 = vpop.f32.mrb[15].mxu0 }
 0x376   : > { %1106 = vmax.xlane.f32.xlu0 %v3273_v40 }
 0x377   : > { %1104 = vmax.xlane.f32.xlu1 %v3281_v43 }
 0x3e6   : > { %v1083_v48 = vpop.xlane.xlu1 %1082 }
 0x3e7   : > { %v3292_v49 = vmax.f32 %v3287_v46, %v1083_v48  ;;  %v1079_v50 = vpop.xlane.xlu0 %1078 }
 0x3e8   : > { %v3295_v51 = vmax.f32 %v3289_v47, %v1079_v50 }
 0x3e9   : > { %1650 = vst.msk [vmem:[#allocation4 + $0x10] sm:$0xff] %vm1382_vm1, %v3292_v49  ;;  %1186 = vperm.xlu1 %2638, %v3292_v49  }
 0x3ea   : > { %1648 = vst.msk [vmem:[#allocation4] sm:$0xff] %vm1382_vm1, %v3295_v51  ;;  %v1085_v54 = vpop.xlane.xlu1 %1084  ;;  %1176 = vperm.xlu0 %2637, %v3295_v51   ;;  %v1126_v20 = vsub.f32 %v3289_v47, %v3295_v51  ;;  %v3399_v51 = vld [vmem:[#allocation4 + $0x70] sm:$0xff] }
 0x3eb   : > { %v3309_v56 = vmax.f32 %v3297_v52, %v1085_v54  ;;  %v1081_v58 = vpop.xlane.xlu0 %1080  ;;  %v1075_v54 = vld [vmem:[#allocation4 + $0x68] sm:$0xff] }
 0x3ec   : > { %v3312_v59 = vmax.f32 %v3302_v53, %v1081_v58  ;;  %v1142_v44 = vmul.f32 1.442695, %v1126_v20 }
 0x3ed   : > { %1651 = vst.msk [vmem:[#allocation4 + $0x18] sm:$0xff] %vm1382_vm1, %v3309_v56  ;;  %1191 = vperm.xlu1 %2638, %v3309_v56   ;;  %v1129_v45 = vsub.f32 %v3297_v52, %v3309_v56 }
 0x3ee   : > { %1649 = vst.msk [vmem:[#allocation4 + $0x8] sm:$0xff] %vm1382_vm1, %v3312_v59  ;;  %v1127_v55 = vsub.f32 %v3302_v53, %v3312_v59  ;;  %2639 = vpow2.f32 %v1142_v44 }
 0x3ef   : > { %v1087_v0 = vpop.xlane.xlu0 %1086  ;;  %v1148_v58 = vmul.f32 1.442695, %v1129_v45 }
 0x3f0   : > { %v3325_v1 = vmax.f32 %v3317_v61, %v1087_v0  ;;  %v1093_v2 = vpop.xlane.xlu1 %1092 }
 0x3f1   : > { %v3328_v3 = vmax.f32 %v3321_v62, %v1093_v2  ;;  %1181 = vperm.xlu1 %2638, %v3312_v59   ;;  %v1128_v59 = vsub.f32 %v3287_v46, %v3292_v49  ;;  %2641 = vpow2.f32 %v1148_v58 }
 0x3f2   : > { %1652 = vst.msk [vmem:[#allocation4 + $0x20] sm:$0xff] %vm1382_vm1, %v3325_v1  ;;  %v1130_v57 = vsub.f32 %v3317_v61, %v3325_v1 }
 0x3f3   : > { %1655 = vst.msk [vmem:[#allocation4 + $0x38] sm:$0xff] %vm1382_vm1, %v3328_v3  ;;  %v1091_v7 = vpop.xlane.xlu0 %1090 }
 0x3f4   : > { %v3341_v8 = vmax.f32 %v3331_v4, %v1091_v7  ;;  %v1089_v9 = vpop.xlane.xlu1 %1088  ;;  %v1144_v7 = vmul.f32 1.442695, %v1127_v55 }
 0x3f5   : > { %v3344_v10 = vmax.f32 %v3335_v5, %v1089_v9 }
 0x3f6   : > { %1654 = vst.msk [vmem:[#allocation4 + $0x30] sm:$0xff] %vm1382_vm1, %v3341_v8  ;;  %1206 = vperm.xlu1 %2638, %v3341_v8   ;;  %2643 = vpow2.f32 %v1144_v7 }
 0x3f7   : > { %1653 = vst.msk [vmem:[#allocation4 + $0x28] sm:$0xff] %vm1382_vm1, %v3344_v10  ;;  %v1095_v60 = vpop.xlane.xlu0 %1094  ;;  %v1131_v63 = vsub.f32 %v3335_v5, %v3344_v10  ;;  %v1133_v5 = vsub.f32 %v3321_v62, %v3328_v3  ;;  %v1150_v62 = vmul.f32 1.442695, %v1130_v57 }
 0x3f8   : > { %v1101_v13 = vpop.xlane.xlu1 %1100  ;;  %v3357_v14 = vmax.f32 %v3346_v11, %v1095_v60  ;;  %v3432_v49 = vpop.eup %2639 }
 0x3f9   : > { %v3360_v15 = vmax.f32 %v3351_v12, %v1101_v13  ;;  %v1152_v9 = vmul.f32 1.442695, %v1131_v63  ;;  %v1156_v60 = vmul.f32 1.442695, %v1133_v5 }
 0x3fa   : > { %1656 = vst.msk [vmem:[#allocation4 + $0x40] sm:$0xff] %vm1382_vm1, %v3357_v14  ;;  %1196 = vperm.xlu1 %2638, %v3325_v1  }
 0x3fb   : > { %1659 = vst.msk [vmem:[#allocation4 + $0x58] sm:$0xff] %vm1382_vm1, %v3360_v15  ;;  %v1099_v19 = vpop.xlane.xlu0 %1098  ;;  %2645 = vpow2.f32 %v1152_v9  ;;  %v1137_v46 = vsub.f32 %v3351_v12, %v3360_v15  ;;  %v3440_v13 = vpop.eup %2641 }
 0x3fc   : > { %v1097_v21 = vpop.xlane.xlu1 %1096  ;;  %v3375_v22 = vmax.f32 %v3362_v16, %v1099_v19 }
 0x3fd   : > { %v3378_v23 = vmax.f32 %v3367_v17, %v1097_v21  ;;  %v1164_v61 = vmul.f32 1.442695, %v1137_v46 }
 0x3fe   : > { %1658 = vst.msk [vmem:[#allocation4 + $0x50] sm:$0xff] %vm1382_vm1, %v3375_v22  ;;  %1201 = vperm.xlu1 %2638, %v3344_v10   ;;  %v1146_v10 = vmul.f32 1.442695, %v1128_v59 }
 0x3ff   : > { %1657 = vst.msk [vmem:[#allocation4 + $0x48] sm:$0xff] %vm1382_vm1, %v3378_v23  ;;  %1221 = vperm.xlu0 %2637, %v3378_v23   ;;  %v1103_v36 = vpop.xlane.xlu0 %1102  ;;  %v1135_v1 = vsub.f32 %v3367_v17, %v3378_v23  ;;  %v1134_v17 = vsub.f32 %v3346_v11, %v3357_v14 }
 0x400   : > { %v1109_v47 = vpop.xlane.xlu1 %1108  ;;  %v3394_v48 = vmax.f32 %v3380_v24, %v1103_v36  ;;  %2647 = vpow2.f32 %v1146_v10  ;;  %v3446_v18 = vpop.eup %2643 }
 0x401   : > { %v3397_v50 = vmax.f32 %v3385_v25, %v1109_v47  ;;  %2649 = vpow2.f32 %v1156_v60  ;;  %v1158_v23 = vmul.f32 1.442695, %v1134_v17 }
 0x402   : > { %1660 = vst.msk [vmem:[#allocation4 + $0x60] sm:$0xff] %vm1382_vm1, %v3394_v48  ;;  %1211 = vperm.xlu1 %2638, %v3328_v3   ;;  %v1132_v3 = vsub.f32 %v3331_v4, %v3341_v8  ;;  %2651 = vpow2.f32 %v1150_v62  ;;  %v1160_v4 = vmul.f32 1.442695, %v1135_v1  ;;  %v1138_v26 = vsub.f32 %v3380_v24, %v3394_v48 }
 0x403   : > { %v1141_v52 = vsub.f32 %v3385_v25, %v3397_v50  ;;  %1663 = vst.msk [vmem:[#allocation4 + $0x78] sm:$0xff] %vm1382_vm1, %v3397_v50  ;;  %1231 = vperm.xlu0 %2637, %v3360_v15   ;;  %v1107_v56 = vpop.xlane.xlu0 %1106  ;;  %v1136_v15 = vsub.f32 %v3362_v16, %v3375_v22  ;;  %2653 = vpow2.f32 %v1164_v61 }
 0x404   : > { %v1105_v0 = vpop.xlane.xlu1 %1104  ;;  %v3414_v2 = vmax.f32 %v3399_v51, %v1107_v56  ;;  %v1154_v12 = vmul.f32 1.442695, %v1132_v3  ;;  %v1166_v36 = vmul.f32 1.442695, %v1138_v26 }
 0x405   : > { %v1123_v6 = vmax.f32 %v1075_v54, %v1105_v0  ;;  %v3448_v19 = vpop.eup %2645  ;;  %v1162_v20 = vmul.f32 1.442695, %v1136_v15 }
 0x406   : > { %v1140_v53 = vsub.f32 %v3399_v51, %v3414_v2  ;;  %1662 = vst.msk [vmem:[#allocation4 + $0x70] sm:$0xff] %vm1382_vm1, %v3414_v2  ;;  %1216 = vperm.xlu1 %2638, %v3357_v14   ;;  %2655 = vpow2.f32 %v1154_v12 }
 0x407   : > { %1661 = vst.msk [vmem:[#allocation4 + $0x68] sm:$0xff] %vm1382_vm1, %v1123_v6  ;;  %1241 = vperm.xlu0 %2637, %v1123_v6   ;;  %v1139_v8 = vsub.f32 %v1075_v54, %v1123_v6  ;;  %2657 = vpow2.f32 %v1160_v4 }
 0x408   : > { %2659 = vpow2.f32 %v1162_v20 }
 0x409   : > { %v1168_v16 = vmul.f32 1.442695, %v1139_v8 }
 0x40a   : > { %1226 = vperm.xlu1 %2638, %v3375_v22   ;;  %v3454_v21 = vpop.eup %2647 }
 0x40b   : > { %1251 = vperm.xlu0 %2637, %v3397_v50   ;;  %v3456_v22 = vpop.eup %2649  ;;  %2661 = vpow2.f32 %v1168_v16 }
 0x40c   : > { %v3462_v11 = vpop.eup %2651  ;;  %2663 = vpow2.f32 %v1158_v23 }
 0x40d   : > { %v3464_v14 = vpop.eup %2653  ;;  %2665 = vpow2.f32 %v1166_v36 }
 0x40e   : > { %1236 = vperm.xlu1 %2638, %v3394_v48  }
 0x40f   : > { %1417 = vperm.xlu0 %2637, %v3432_v49  }
 0x410   : > { %v3468_v44 = vpop.eup %2655 }
 0x411   : > { %v3470_v45 = vpop.eup %2657 }
 0x412   : > { %1246 = vperm.xlu1 %2638, %v3414_v2   ;;  %v3474_v24 = vpop.eup %2659 }
 0x413   : > { %1432 = vperm.xlu0 %2637, %v3440_v13  }
 0x415   : > { %v3476_v47 = vpop.eup %2661 }
 0x416   : > { %1422 = vperm.xlu1 %2638, %v3446_v18   ;;  %v3480_v48 = vpop.eup %2663 }
 0x417   : > { %1442 = vperm.xlu0 %2637, %v3448_v19   ;;  %v3483_v54 = vpop.eup %2665 }
 0x41a   : > { %1427 = vperm.xlu1 %2638, %v3454_v21  }
 0x41b   : > { %1452 = vperm.xlu0 %2637, %v3456_v22  }
 0x41e   : > { %1437 = vperm.xlu1 %2638, %v3462_v11  }
 0x41f   : > { %1472 = vperm.xlu0 %2637, %v3464_v14  }
 0x422   : > { %1447 = vperm.xlu1 %2638, %v3468_v44  }
 0x423   : > { %1462 = vperm.xlu0 %2637, %v3470_v45  }
 0x426   : > { %1467 = vperm.xlu1 %2638, %v3474_v24  }
 0x427   : > { %1482 = vperm.xlu0 %2637, %v3476_v47  }
 0x42a   : > { %1457 = vperm.xlu1 %2638, %v3480_v48  }
 0x42e   : > { %1477 = vperm.xlu1 %2638, %v3483_v54  }
 0x468   : > { %v1187_v55 = vpop.permute.xlu1 %1186 }
 0x469   : > { %v1256_v56 = vsub.f32 %v3237_v27, %v1187_v55  ;;  %v1177_v58 = vpop.permute.xlu0 %1176 }
 0x46a   : > { %v1254_v63 = vsub.f32 %v3240_v28, %v1177_v58 }
 0x46b   : > { %v1274_v0 = vmul.f32 1.442695, %v1256_v56 }
 0x46c   : > { %v1270_v6 = vmul.f32 1.442695, %v1254_v63  ;;  %v1192_v59 = vpop.permute.xlu1 %1191 }
 0x46d   : > { %2667 = vpow2.f32 %v1274_v0  ;;  %v1257_v7 = vsub.f32 %v3243_v29, %v1192_v59 }
 0x46e   : > { %2669 = vpow2.f32 %v1270_v6 }
 0x46f   : > { %v1276_v5 = vmul.f32 1.442695, %v1257_v7 }
 0x470   : > { %v1182_v9 = vpop.permute.xlu1 %1181 }
 0x471   : > { %2671 = vpow2.f32 %v1276_v5  ;;  %v1255_v10 = vsub.f32 %v3245_v30, %v1182_v9 }
 0x473   : > { %v1272_v57 = vmul.f32 1.442695, %v1255_v10 }
 0x475   : > { %2673 = vpow2.f32 %v1272_v57  ;;  %v1207_v60 = vpop.permute.xlu1 %1206 }
 0x476   : > { %v1260_v27 = vsub.f32 %v3249_v31, %v1207_v60 }
 0x477   : > { %v2668_v46 = vpop.eup %2667 }
 0x478   : > { %v2670_v62 = vpop.eup %2669  ;;  %v1282_v28 = vmul.f32 1.442695, %v1260_v27  ;;  %1338 = vadd.xlane.f32.xlu0 %v2668_v46 }
 0x479   : > { %1334 = vadd.xlane.f32.xlu1 %v2670_v62  ;;  %v1197_v3 = vpop.permute.xlu1 %1196 }
 0x47a   : > { %2675 = vpow2.f32 %v1282_v28  ;;  %v1258_v29 = vsub.f32 %v3251_v32, %v1197_v3 }
 0x47b   : > { %v2672_v61 = vpop.eup %2671 }
 0x47c   : > { %v1278_v1 = vmul.f32 1.442695, %v1258_v29  ;;  %v1512_v12 = vpack.c.bf16 %v2672_v61, %v2668_v46 }
 0x47d   : > { %1340 = vadd.xlane.f32.xlu1 %v2672_v61  ;;  %v1202_v15 = vpop.permute.xlu1 %1201 }
 0x47e   : > { %2677 = vpow2.f32 %v1278_v1  ;;  %v1259_v30 = vsub.f32 %v3257_v34, %v1202_v15  ;;  %v1222_v4 = vpop.permute.xlu0 %1221 }
 0x47f   : > { %v2674_v8 = vpop.eup %2673  ;;  %v1263_v20 = vsub.f32 %v3269_v39, %v1222_v4 }
 0x480   : > { %v1280_v31 = vmul.f32 1.442695, %v1259_v30  ;;  %1336 = vadd.xlane.f32.xlu0 %v2674_v8  ;;  %v1511_v17 = vpack.c.bf16 %v2674_v8, %v2670_v62 }
 0x481   : > { %v1212_v16 = vpop.permute.xlu1 %1211  ;;  %v1288_v55 = vmul.f32 1.442695, %v1263_v20  ;;  %v1170_v20 = vmul.f32 1.442695, %v1140_v53 }
 0x482   : > { %2679 = vpow2.f32 %v1280_v31  ;;  %v1261_v23 = vsub.f32 %v3254_v33, %v1212_v16  ;;  %v1232_v32 = vpop.permute.xlu0 %1231  ;;  %2415 = vmatprep.mubr.bf16.mxu1 %v1511_v17  ;;  %v1172_v16 = vmul.f32 1.442695, %v1141_v52 }
 0x483   : > { %2416 = vmatmul.mubr.bf16.vlgmr.msra.gmra.mrb[0].mxu1 %v1512_v12  ;;  %v1265_v56 = vsub.f32 %v3265_v38, %v1232_v32 }
 0x484   : > { %v2676_v26 = vpop.eup %2675  ;;  %v1284_v36 = vmul.f32 1.442695, %v1261_v23 }
 0x485   : > { %1346 = vadd.xlane.f32.xlu0 %v2676_v26  ;;  %v1217_v34 = vpop.permute.xlu1 %1216  ;;  %v1292_v6 = vmul.f32 1.442695, %v1265_v56 }
 0x486   : > { %2681 = vpow2.f32 %v1284_v36  ;;  %v1262_v58 = vsub.f32 %v3263_v37, %v1217_v34  ;;  %v1242_v63 = vpop.permute.xlu0 %1241 }
 0x487   : > { %2683 = vpow2.f32 %v1288_v55  ;;  %v1267_v33 = vsub.f32 %v3281_v43, %v1242_v63 }
 0x488   : > { %v2678_v0 = vpop.eup %2677  ;;  %v1286_v39 = vmul.f32 1.442695, %v1262_v58 }
 0x489   : > { %1342 = vadd.xlane.f32.xlu0 %v2678_v0  ;;  %v1227_v59 = vpop.permute.xlu1 %1226  ;;  %v1296_v10 = vmul.f32 1.442695, %v1267_v33 }
 0x48a   : > { %2685 = vpow2.f32 %v1286_v39  ;;  %v1264_v7 = vsub.f32 %v3261_v35, %v1227_v59  ;;  %v1252_v5 = vpop.permute.xlu0 %1251 }
 0x48b   : > { %2687 = vpow2.f32 %v1292_v6  ;;  %v1269_v57 = vsub.f32 %v3277_v42, %v1252_v5  ;;  %v1302_v6 = vld [vmem:[#allocation5] sm:$0xff] }
 0x48c   : > { %v2680_v9 = vpop.eup %2679  ;;  %v1290_v38 = vmul.f32 1.442695, %v1264_v7  ;;  %v1318_v7 = vmul.f32 %v3432_v49, %v1302_v6  ;;  %v1308_v49 = vld [vmem:[#allocation5 + $0x30] sm:$0xff] }
 0x48d   : > { %v1237_v37 = vpop.permute.xlu1 %1236  ;;  %v1513_v60 = vpack.c.bf16 %v2680_v9, %v2678_v0  ;;  %v1300_v62 = vmul.f32 1.442695, %v1269_v57  ;;  %v1304_v0 = vld [vmem:[#allocation5 + $0x10] sm:$0xff] }
 0x48e   : > { %2689 = vpow2.f32 %v1290_v38  ;;  %v1266_v27 = vsub.f32 %v3275_v41, %v1237_v37  ;;  %v1320_v33 = vmul.f32 %v3454_v21, %v1304_v0  ;;  %v1305_v38 = vld [vmem:[#allocation5 + $0x18] sm:$0xff]  ;;  %v1303_v37 = vld [vmem:[#allocation5 + $0x8] sm:$0xff] }
 0x48f   : > { %2419 = vmatprep.mubr.bf16.mxu1 %v1513_v60  ;;  %2691 = vpow2.f32 %v1296_v10  ;;  %v1321_v57 = vmul.f32 %v3440_v13, %v1305_v38 }
 0x490   : > { %v2682_v46 = vpop.eup %2681  ;;  %v1294_v43 = vmul.f32 1.442695, %v1266_v27 }
 0x491   : > { %1348 = vadd.xlane.f32.xlu1 %v2682_v46  ;;  %v1247_v28 = vpop.permute.xlu1 %1246  ;;  %v1514_v35 = vpack.c.bf16 %v2682_v46, %v2676_v26  ;;  %v2684_v29 = vpop.eup %2683  ;;  %v1319_v46 = vmul.f32 %v3446_v18, %v1303_v37  ;;  %v1309_v18 = vld [vmem:[#allocation5 + $0x38] sm:$0xff]  ;;  %v1314_v37 = vld [vmem:[#allocation5 + $0x60] sm:$0xff] }
 0x492   : > { %2693 = vpow2.f32 %v1294_v43  ;;  %v1268_v3 = vsub.f32 %v3273_v40, %v1247_v28  ;;  %v3514_v26 = vpop.permute.xlu0 %1417 }
 0x493   : > { %2420 = vmatmul.mubr.bf16.gmra.mrb[4].mxu1 %v1514_v35  ;;  %2695 = vpow2.f32 %v1300_v62  ;;  %v1324_v62 = vmul.f32 %v3468_v44, %v1308_v49  ;;  %v1306_v35 = vld [vmem:[#allocation5 + $0x20] sm:$0xff] }
 0x494   : > { %v2686_v61 = vpop.eup %2685  ;;  %v1298_v42 = vmul.f32 1.442695, %v1268_v3  ;;  %v1322_v13 = vmul.f32 %v3462_v11, %v1306_v35  ;;  %v1400_v35 = vld [vmem:[#allocation6 + $0x8] sm:$0xff] }
 0x495   : > { %1344 = vadd.xlane.f32.xlu1 %v2680_v9  ;;  %v1515_v1 = vpack.c.bf16 %v2684_v29, %v2686_v61  ;;  %v2688_v41 = vpop.eup %2687  ;;  %v3516_v36 = vpop.permute.xlu1 %1422 }
 0x496   : > { %2697 = vpow2.f32 %v1298_v42  ;;  %v3518_v51 = vpop.permute.xlu0 %1432  ;;  %v1325_v42 = vmul.f32 %v3456_v22, %v1309_v18  ;;  %v1310_v22 = vld [vmem:[#allocation5 + $0x40] sm:$0xff]  ;;  %v1496_v18 = vmul.f32 %v3516_v36, %v1400_v35 }
 0x497   : > { %2423 = vmatprep.mubr.bf16.mxu1 %v1515_v1  ;;  %2699 = vpow2.f32 %v1170_v20  ;;  %v1311_v20 = vld [vmem:[#allocation5 + $0x48] sm:$0xff] }
 0x498   : > { %v2690_v12 = vpop.eup %2689  ;;  %2701 = vpow2.f32 %v1172_v16  ;;  %v1327_v6 = vmul.f32 %v3470_v45, %v1311_v20 }
 0x499   : > { %1356 = vadd.xlane.f32.xlu1 %v2688_v41  ;;  %1354 = vadd.xlane.f32.xlu0 %v2690_v12  ;;  %v1516_v15 = vpack.c.bf16 %v2688_v41, %v2690_v12  ;;  %v2692_v30 = vpop.eup %2691  ;;  %v3520_v2 = vpop.permute.xlu1 %1427  ;;  %v1307_v41 = vld [vmem:[#allocation5 + $0x28] sm:$0xff] }
 0x49a   : > { %v3522_v53 = vpop.permute.xlu0 %1442  ;;  %v1323_v44 = vmul.f32 %v3448_v19, %v1307_v41  ;;  %v1326_v19 = vmul.f32 %v3480_v48, %v1310_v22  ;;  %v1315_v48 = vld [vmem:[#allocation5 + $0x68] sm:$0xff] }
 0x49b   : > { %2424 = vmatmul.mubr.bf16.gmra.mrb[8].mxu1 %v1516_v15 }
 0x49c   : > { %v2694_v4 = vpop.eup %2693 }
 0x49d   : > { %1352 = vadd.xlane.f32.xlu1 %v2684_v29  ;;  %1350 = vadd.xlane.f32.xlu0 %v2686_v61  ;;  %v1517_v40 = vpack.c.bf16 %v2692_v30, %v2694_v4  ;;  %v2696_v8 = vpop.eup %2695  ;;  %v3524_v25 = vpop.permute.xlu1 %1437 }
 0x49e   : > { %v3526_v50 = vpop.permute.xlu0 %1452 }
 0x49f   : > { %2427 = vmatprep.mubr.bf16.mxu1 %v1517_v40 }
 0x4a0   : > { %v2698_v31 = vpop.eup %2697 }
 0x4a1   : > { %1364 = vadd.xlane.f32.xlu1 %v2696_v8  ;;  %1362 = vadd.xlane.f32.xlu0 %v2698_v31  ;;  %v1518_v17 = vpack.c.bf16 %v2696_v8, %v2698_v31  ;;  %v3508_v23 = vpop.eup %2699  ;;  %v3528_v52 = vpop.permute.xlu1 %1447 }
 0x4a2   : > { %v3511_v32 = vpop.eup %2701  ;;  %v3530_v55 = vpop.permute.xlu0 %1472 }
 0x4a3   : > { %2428 = vmatmul.mubr.bf16.gmra.mrb[12].mxu1 %v1518_v17 }
 0x4a5   : > { %1360 = vadd.xlane.f32.xlu1 %v2692_v30  ;;  %1358 = vadd.xlane.f32.xlu0 %v2694_v4  ;;  %v3532_v56 = vpop.permute.xlu1 %1467  ;;  %v1312_v30 = vld [vmem:[#allocation5 + $0x50] sm:$0xff]  ;;  %v1313_v4 = vld [vmem:[#allocation5 + $0x58] sm:$0xff] }
 0x4a6   : > { %v3534_v34 = vpop.permute.xlu0 %1462  ;;  %v1328_v11 = vmul.f32 %v3474_v24, %v1312_v30  ;;  %v1329_v8 = vmul.f32 %v3464_v14, %v1313_v4  ;;  %v1317_v24 = vld [vmem:[#allocation5 + $0x78] sm:$0xff] }
 0x4a7   : > { %v1333_v38 = vmul.f32 %v3511_v32, %v1317_v24  ;;  %v1406_v30 = vld [vmem:[#allocation6 + $0x38] sm:$0xff] }
 0x4a8   : > { %v1502_v36 = vmul.f32 %v3526_v50, %v1406_v30 }
 0x4a9   : > { %v3536_v58 = vpop.permute.xlu1 %1457 }
 0x4aa   : > { %v3538_v63 = vpop.permute.xlu0 %1482 }
 0x4ad   : > { %v3540_v39 = vpop.permute.xlu1 %1477 }
 0x4b6   : > { %1487 = vperm.xlu1 %2638, %v3508_v23  }
 0x4bb   : > { %1492 = vperm.xlu0 %2637, %v3511_v32   ;;  %v1401_v32 = vld [vmem:[#allocation6 + $0x10] sm:$0xff] }
 0x505   : > { %v1339_v59 = vpop.xlane.xlu0 %1338 }
 0x506   : > { %v1368_v5 = vadd.f32 %v1339_v59, %v1320_v33  ;;  %v1335_v9 = vpop.xlane.xlu1 %1334 }
 0x507   : > { %v1366_v10 = vadd.f32 %v1335_v9, %v1318_v7  ;;  %v1316_v7 = vld [vmem:[#allocation5 + $0x70] sm:$0xff] }
 0x508   : > { %1385 = vst.msk [vmem:[#allocation5 + $0x10] sm:$0xff] %vm1382_vm1, %v1368_v5  ;;  %v1332_v9 = vmul.f32 %v3508_v23, %v1316_v7 }
 0x509   : > { %1383 = vst.msk [vmem:[#allocation5] sm:$0xff] %vm1382_vm1, %v1366_v10 }
 0x50a   : > { %v1341_v60 = vpop.xlane.xlu1 %1340 }
 0x50b   : > { %v1369_v27 = vadd.f32 %v1341_v60, %v1321_v57 }
 0x50d   : > { %1386 = vst.msk [vmem:[#allocation5 + $0x18] sm:$0xff] %vm1382_vm1, %v1369_v27  ;;  %v1337_v21 = vpop.xlane.xlu0 %1336  ;;  %v1330_v27 = vmul.f32 %v3483_v54, %v1314_v37 }
 0x50e   : > { %v1367_v43 = vadd.f32 %v1337_v21, %v1319_v46  ;;  %v1331_v46 = vmul.f32 %v3476_v47, %v1315_v48 }
 0x510   : > { %1384 = vst.msk [vmem:[#allocation5 + $0x8] sm:$0xff] %vm1382_vm1, %v1367_v43 }
 0x512   : > { %v1347_v28 = vpop.xlane.xlu0 %1346 }
 0x513   : > { %v1372_v3 = vadd.f32 %v1347_v28, %v1324_v62  ;;  %v1399_v62 = vld [vmem:[#allocation6] sm:$0xff]  ;;  %v1402_v28 = vld [vmem:[#allocation6 + $0x18] sm:$0xff] }
 0x514   : > { %v1498_v54 = vmul.f32 %v3518_v51, %v1402_v28 }
 0x515   : > { %1389 = vst.msk [vmem:[#allocation5 + $0x30] sm:$0xff] %vm1382_vm1, %v1372_v3  ;;  %v1497_v3 = vmul.f32 %v3520_v2, %v1401_v32  ;;  %v1403_v2 = vld [vmem:[#allocation6 + $0x20] sm:$0xff] }
 0x516   : > { %v1343_v29 = vpop.xlane.xlu0 %1342  ;;  %v1499_v51 = vmul.f32 %v3524_v25, %v1403_v2  ;;  %v1408_v25 = vld [vmem:[#allocation6 + $0x48] sm:$0xff]  ;;  %v2707_v2 = vld [vmem:[%s3774_s6 + $0x10] sm:$0xff] (!%p2253_p5)  }
 0x517   : > { %v1370_v61 = vadd.f32 %v1343_v29, %v1322_v13  ;;  %v1495_v13 = vmul.f32 %v3514_v26, %v1399_v62  ;;  %v1404_v26 = vld [vmem:[#allocation6 + $0x28] sm:$0xff] }
 0x519   : > { %1387 = vst.msk [vmem:[#allocation5 + $0x20] sm:$0xff] %vm1382_vm1, %v1370_v61 }
 0x51e   : > { %v1349_v1 = vpop.xlane.xlu1 %1348 }
 0x51f   : > { %v1373_v12 = vadd.f32 %v1349_v1, %v1325_v42 }
 0x521   : > { %1390 = vst.msk [vmem:[#allocation5 + $0x38] sm:$0xff] %vm1382_vm1, %v1373_v12 }
 0x522   : > { %v1345_v15 = vpop.xlane.xlu1 %1344 }
 0x523   : > { %v1371_v40 = vadd.f32 %v1345_v15, %v1323_v44  ;;  %v1405_v15 = vld [vmem:[#allocation6 + $0x30] sm:$0xff] }
 0x524   : > { %v1501_v4 = vmul.f32 %v3528_v52, %v1405_v15  ;;  %v1410_v52 = vld [vmem:[#allocation6 + $0x58] sm:$0xff] }
 0x525   : > { %1388 = vst.msk [vmem:[#allocation5 + $0x28] sm:$0xff] %vm1382_vm1, %v1371_v40 }
 0x526   : > { %v1355_v31 = vpop.xlane.xlu0 %1354  ;;  %v1357_v17 = vpop.xlane.xlu1 %1356 }
 0x527   : > { %v1376_v16 = vadd.f32 %v1355_v31, %v1328_v11  ;;  %v1377_v0 = vadd.f32 %v1357_v17, %v1329_v8  ;;  %v1500_v31 = vmul.f32 %v3522_v53, %v1404_v26  ;;  %v1506_v53 = vmul.f32 %v3530_v55, %v1410_v52 }
 0x529   : > { %1393 = vst.msk [vmem:[#allocation5 + $0x50] sm:$0xff] %vm1382_vm1, %v1376_v16  ;;  %1394 = vst.msk [vmem:[#allocation5 + $0x58] sm:$0xff] %vm1382_vm1, %v1377_v0  ;;  %v1409_v0 = vld [vmem:[#allocation6 + $0x50] sm:$0xff] }
 0x52a   : > { %v1351_v33 = vpop.xlane.xlu0 %1350  ;;  %v1353_v59 = vpop.xlane.xlu1 %1352 }
 0x52b   : > { %v1374_v5 = vadd.f32 %v1351_v33, %v1326_v19  ;;  %v1375_v14 = vadd.f32 %v1353_v59, %v1327_v6  ;;  %v1407_v6 = vld [vmem:[#allocation6 + $0x40] sm:$0xff]  ;;  %v1505_v33 = vmul.f32 %v3532_v56, %v1409_v0  ;;  %v1414_v56 = vld [vmem:[#allocation6 + $0x78] sm:$0xff]  ;;  %v3618_v0 = vld [vmem:[#allocation5 + $0x30] sm:$0xff] (!%p2253_p5) }
 0x52c   : > { %v1503_v50 = vmul.f32 %v3536_v58, %v1407_v6 }
 0x52d   : > { %1391 = vst.msk [vmem:[#allocation5 + $0x40] sm:$0xff] %vm1382_vm1, %v1374_v5  ;;  %1392 = vst.msk [vmem:[#allocation5 + $0x48] sm:$0xff] %vm1382_vm1, %v1375_v14  ;;  %v1504_v5 = vmul.f32 %v3534_v34, %v1408_v25 }
 0x52e   : > { %v1363_v10 = vpop.xlane.xlu0 %1362  ;;  %v1365_v57 = vpop.xlane.xlu1 %1364 }
 0x52f   : > { %v1380_v60 = vadd.f32 %v1363_v10, %v1332_v9  ;;  %v1381_v45 = vadd.f32 %v1365_v57, %v1333_v38  ;;  %v1413_v57 = vld [vmem:[#allocation6 + $0x70] sm:$0xff] }
 0x531   : > { %1397 = vst.msk [vmem:[#allocation5 + $0x70] sm:$0xff] %vm1382_vm1, %v1380_v60  ;;  %1398 = vst.msk [vmem:[#allocation5 + $0x78] sm:$0xff] %vm1382_vm1, %v1381_v45  ;;  %v1411_v60 = vld [vmem:[#allocation6 + $0x60] sm:$0xff]  ;;  %v1412_v45 = vld [vmem:[#allocation6 + $0x68] sm:$0xff] }
 0x532   : > { %v1359_v21 = vpop.xlane.xlu0 %1358  ;;  %v1361_v43 = vpop.xlane.xlu1 %1360 }
 0x533   : > { %v1378_v49 = vadd.f32 %v1359_v21, %v1330_v27  ;;  %v1379_v23 = vadd.f32 %v1361_v43, %v1331_v46  ;;  %v1507_v27 = vmul.f32 %v3540_v39, %v1411_v60  ;;  %v1668_v39 = vld [vmem:[#allocation5] sm:$0xff] (!%p2253_p5) }
 0x535   : > { %1395 = vst.msk [vmem:[#allocation5 + $0x60] sm:$0xff] %vm1382_vm1, %v1378_v49  ;;  %1396 = vst.msk [vmem:[#allocation5 + $0x68] sm:$0xff] %vm1382_vm1, %v1379_v23  ;;  %v1508_v49 = vmul.f32 %v3538_v63, %v1412_v45  ;;  %v1669_v63 = vld [vmem:[#allocation5 + $0x8] sm:$0xff] (!%p2253_p5) }
 0x536   : > { %v1488_v37 = vpop.permute.xlu1 %1487 }
 0x537   : > { %v1509_v55 = vmul.f32 %v1488_v37, %v1413_v57 }
 0x538   : > { %v1682_v60 = vld [vmem:[#allocation5 + $0x70] sm:$0xff] (!%p2253_p5) }
 0x53a   : > { %v1493_v58 = vpop.permute.xlu0 %1492 }
 0x53b   : > { %v1510_v34 = vmul.f32 %v1493_v58, %v1414_v56 }
 0x53c   : > { %v3606_v15 = vld [vmem:[#allocation5 + $0x60] sm:$0xff] (!%p2253_p5) }
 0x556   : > { %v2417_v29 = vpop.f32.mrb[0].mxu1 }
 0x557   : > { %v1618_v47 = vadd.f32 %v2417_v29, %v1497_v3  ;;  %v1553_v61 = vpop.f32.mrb[1].mxu1  ;;  %v1676_v3 = vld [vmem:[#allocation5 + $0x40] sm:$0xff] (!%p2253_p5)  ;;  %v2861_v29 = vmov (!%p2253_p5), 0  }
 0x558   : > { %v1616_v42 = vadd.f32 %v1553_v61, %v1495_v13  ;;  %v2418_v1 = vpop.f32.mrb[2].mxu1  ;;  %v1677_v13 = vld [vmem:[#allocation5 + $0x48] sm:$0xff] (!%p2253_p5)  ;;  %2704 = vset.pattern.permute.xlu1 (!%p2253_p5), %v2861_v29  ;;  %2703 = vset.pattern.permute.xlu0 (!%p2253_p5), %v2861_v29  ;;  %2713 = vrcp.f32 (!%p2253_p5), %v1676_v3  ;;  %v1679_v61 = vld [vmem:[#allocation5 + $0x58] sm:$0xff] (!%p2253_p5) }
 0x559   : > { %1634 = vst [vmem:[#allocation6 + $0x10] sm:$0xff] %v1618_v47  ;;  %v1619_v41 = vadd.f32 %v2418_v1, %v1498_v54  ;;  %v1556_v12 = vpop.f32.mrb[3].mxu1  ;;  %2715 = vrcp.f32 (!%p2253_p5), %v1668_v39  ;;  %v1671_v54 = vld [vmem:[#allocation5 + $0x18] sm:$0xff] (!%p2253_p5)  ;;  %v1670_v47 = vld [vmem:[#allocation5 + $0x10] sm:$0xff] (!%p2253_p5)  ;;  %v3593_v1 = vld [vmem:[#allocation5 + $0x20] sm:$0xff] (!%p2253_p5) }
 0x55a   : > { %1632 = vst [vmem:[#allocation6] sm:$0xff] %v1616_v42  ;;  %v1617_v44 = vadd.f32 %v1556_v12, %v1496_v18  ;;  %2717 = vrcp.f32 (!%p2253_p5), %v1677_v13  ;;  %v3589_v18 = vld [vmem:[#allocation5 + $0x50] sm:$0xff] (!%p2253_p5)  ;;  %v3591_v42 = vld [vmem:[#allocation5 + $0x28] sm:$0xff] (!%p2253_p5) }
 0x55b   : > { %1635 = vst [vmem:[#allocation6 + $0x18] sm:$0xff] %v1619_v41  ;;  %2719 = vrcp.f32 (!%p2253_p5), %v1669_v63  ;;  %v2705_v41 = vld [vmem:[%s3774_s6] sm:$0xff] (!%p2253_p5)   ;;  %v2706_v12 = vld [vmem:[%s3774_s6 + $0x8] sm:$0xff] (!%p2253_p5)  }
 0x55c   : > { %1633 = vst [vmem:[#allocation6 + $0x8] sm:$0xff] %v1617_v44  ;;  %2721 = vrcp.f32 (!%p2253_p5), %v1671_v54  ;;  %2431 = vmatprep.subr.bf16.mxu0 (!%p2253_p5), %v2705_v41  ;;  %2495 = vmatprep.subr.bf16.mxu1 (!%p2253_p5), %v2705_v41  ;;  %v3603_v44 = vld [vmem:[#allocation5 + $0x68] sm:$0xff] (!%p2253_p5) }
 0x55d   : > { %2723 = vrcp.f32 (!%p2253_p5), %v1670_v47  ;;  %2432 = vmatpush3.bf16.msra.mxu0 (!%p2253_p5), %v2705_v41  ;;  %2503 = vmatpush3.bf16.msra.mxu1 (!%p2253_p5), %v2705_v41 }
 0x55e   : > { %2725 = vrcp.f32 (!%p2253_p5), %v1679_v61  ;;  %2433 = vmatprep.subr.bf16.mxu0 (!%p2253_p5), %v2706_v12  ;;  %2496 = vmatprep.subr.bf16.mxu1 (!%p2253_p5), %v2706_v12 }
 0x55f   : > { %2727 = vrcp.f32 (!%p2253_p5), %v3589_v18 }
 0x560   : > { %2729 = vrcp.f32 (!%p2253_p5), %v3591_v42 }
 0x561   : > { %2731 = vrcp.f32 (!%p2253_p5), %v3593_v1  ;;  %2434 = vmatpush3.bf16.msra.mxu0 (!%p2253_p5), %v2706_v12  ;;  %2504 = vmatpush3.bf16.msra.mxu1 (!%p2253_p5), %v2706_v12 }
 0x562   : > { %v2714_v30 = vpop.eup (!%p2253_p5), %2713  ;;  %2733 = vrcp.f32 (!%p2253_p5), %v3603_v44  ;;  %2435 = vmatprep.subr.bf16.mxu0 (!%p2253_p5), %v2707_v2  ;;  %2497 = vmatprep.subr.bf16.mxu1 (!%p2253_p5), %v2707_v2 }
 0x563   : > { %v2716_v26 = vpop.eup (!%p2253_p5), %2715  ;;  %2735 = vrcp.f32 (!%p2253_p5), %v3606_v15 }
 0x565   : > { %2436 = vmatpush3.bf16.msra.mxu0 (!%p2253_p5), %v2707_v2  ;;  %2505 = vmatpush3.bf16.msra.mxu1 (!%p2253_p5), %v2707_v2 }
 0x566   : > { %v2421_v40 = vpop.f32.mrb[4].mxu1 }
 0x567   : > { %v1622_v11 = vadd.f32 %v2421_v40, %v1501_v4  ;;  %v1569_v8 = vpop.f32.mrb[5].mxu1  ;;  %v1708_v4 = vmul.f32 (!%p2253_p5), %v2714_v30, %v1676_v3  ;;  %v1700_v40 = vmul.f32 (!%p2253_p5), %v2716_v26, %v1668_v39 }
 0x568   : > { %v1620_v17 = vadd.f32 %v1569_v8, %v1499_v51  ;;  %v2422_v22 = vpop.f32.mrb[6].mxu1  ;;  %v2718_v51 = vpop.eup (!%p2253_p5), %2717 }
 0x569   : > { %1638 = vst [vmem:[#allocation6 + $0x30] sm:$0xff] %v1622_v11  ;;  %v1623_v20 = vadd.f32 %v2422_v22, %v1502_v36  ;;  %v1572_v16 = vpop.f32.mrb[7].mxu1  ;;  %v2720_v36 = vpop.eup (!%p2253_p5), %2719  ;;  %v1724_v11 = vsub.f32 (!%p2253_p5), 2.0, %v1708_v4  ;;  %v1709_v8 = vmul.f32 (!%p2253_p5), %v2718_v51, %v1677_v13 }
 0x56a   : > { %1636 = vst [vmem:[#allocation6 + $0x20] sm:$0xff] %v1620_v17  ;;  %v1621_v19 = vadd.f32 %v1572_v16, %v1500_v31  ;;  %v3613_v31 = vld [vmem:[#allocation5 + $0x38] sm:$0xff] (!%p2253_p5)  ;;  %v2722_v22 = vpop.eup (!%p2253_p5), %2721  ;;  %v1701_v16 = vmul.f32 (!%p2253_p5), %v2720_v36, %v1669_v63 }
 0x56b   : > { %1639 = vst [vmem:[#allocation6 + $0x38] sm:$0xff] %v1623_v20  ;;  %v2708_v17 = vld [vmem:[%s3774_s6 + $0x18] sm:$0xff] (!%p2253_p5)   ;;  %v1716_v20 = vsub.f32 (!%p2253_p5), 2.0, %v1700_v40  ;;  %v1740_v6 = vmul.f32 (!%p2253_p5), %v2714_v30, %v1724_v11  ;;  %v1725_v52 = vsub.f32 (!%p2253_p5), 2.0, %v1709_v8  ;;  %v1703_v25 = vmul.f32 (!%p2253_p5), %v2722_v22, %v1671_v54 }
 0x56c   : > { %1637 = vst [vmem:[#allocation6 + $0x28] sm:$0xff] %v1621_v19  ;;  %v2724_v19 = vpop.eup (!%p2253_p5), %2723  ;;  %2737 = vrcp.f32 (!%p2253_p5), %v3613_v31  ;;  %2437 = vmatprep.subr.bf16.mxu0 (!%p2253_p5), %v2708_v17  ;;  %2498 = vmatprep.subr.bf16.mxu1 (!%p2253_p5), %v2708_v17 }
 0x56d   : > { %1806 = vperm.xlu1 (!%p2253_p5), %2704, %v1740_v6   ;;  %2739 = vrcp.f32 (!%p2253_p5), %v3618_v0  ;;  %2438 = vmatpush3.bf16.msra.mxu0 (!%p2253_p5), %v2708_v17 }
 0x56e   : > { %v2425_v59 = vpop.f32.mrb[8].mxu1  ;;  %2506 = vmatpush3.bf16.msra.mxu1 (!%p2253_p5), %v2708_v17 }
 0x56f   : > { %v1626_v7 = vadd.f32 %v2425_v59, %v1505_v33  ;;  %v1585_v24 = vpop.f32.mrb[9].mxu1  ;;  %v2726_v33 = vpop.eup (!%p2253_p5), %2725  ;;  %v1717_v59 = vsub.f32 (!%p2253_p5), 2.0, %v1701_v16 }
 0x570   : > { %v1624_v14 = vadd.f32 %v1585_v24, %v1503_v50  ;;  %v2426_v9 = vpop.f32.mrb[10].mxu1  ;;  %v1732_v50 = vmul.f32 (!%p2253_p5), %v2716_v26, %v1716_v20  ;;  %v1741_v24 = vmul.f32 (!%p2253_p5), %v2718_v51, %v1725_v52 }
 0x571   : > { %1642 = vst [vmem:[#allocation6 + $0x50] sm:$0xff] %v1626_v7  ;;  %v1627_v38 = vadd.f32 %v2426_v9, %v1506_v53  ;;  %v1588_v10 = vpop.f32.mrb[11].mxu1  ;;  %v1702_v53 = vmul.f32 (!%p2253_p5), %v2724_v19, %v1670_v47  ;;  %v2728_v7 = vpop.eup (!%p2253_p5), %2727  ;;  %v3622_v9 = vld [vmem:[#allocation5 + $0x78] sm:$0xff] (!%p2253_p5)  ;;  %v1733_v57 = vmul.f32 (!%p2253_p5), %v2720_v36, %v1717_v59 }
 0x572   : > { %1640 = vst [vmem:[#allocation6 + $0x40] sm:$0xff] %v1624_v14  ;;  %v1625_v48 = vadd.f32 %v1588_v10, %v1504_v5  ;;  %v1719_v5 = vsub.f32 (!%p2253_p5), 2.0, %v1703_v25  ;;  %v1711_v14 = vmul.f32 (!%p2253_p5), %v2726_v33, %v1679_v61  ;;  %v2730_v10 = vpop.eup (!%p2253_p5), %2729  ;;  %1766 = vperm.xlu0 (!%p2253_p5), %2703, %v1732_v50   ;;  %2741 = vrcp.f32 (!%p2253_p5), %v3622_v9  ;;  %1811 = vperm.xlu1 (!%p2253_p5), %2704, %v1741_v24   ;;  %v2712_v61 = vld [vmem:[%s3774_s6 + $0x38] sm:$0xff] (!%p2253_p5)  }
 0x573   : > { %1643 = vst [vmem:[#allocation6 + $0x58] sm:$0xff] %v1627_v38  ;;  %v2709_v38 = vld [vmem:[%s3774_s6 + $0x20] sm:$0xff] (!%p2253_p5)   ;;  %v1718_v37 = vsub.f32 (!%p2253_p5), 2.0, %v1702_v53  ;;  %v2732_v56 = vpop.eup (!%p2253_p5), %2731  ;;  %2743 = vrcp.f32 (!%p2253_p5), %v1682_v60  ;;  %v1751_v53 = vld [vmem:[#allocation6 + $0x18] sm:$0xff] (!%p2253_p5) }
 0x574   : > { %1641 = vst [vmem:[#allocation6 + $0x48] sm:$0xff] %v1625_v48  ;;  %v1710_v48 = vmul.f32 (!%p2253_p5), %v2728_v7, %v3589_v18  ;;  %v1735_v58 = vmul.f32 (!%p2253_p5), %v2722_v22, %v1719_v5  ;;  %v1727_v45 = vsub.f32 (!%p2253_p5), 2.0, %v1711_v14  ;;  %2439 = vmatprep.subr.bf16.mxu0 (!%p2253_p5), %v2709_v38  ;;  %2499 = vmatprep.subr.bf16.mxu1 (!%p2253_p5), %v2709_v38 }
 0x575   : > { %2440 = vmatpush3.bf16.msra.mxu0 (!%p2253_p5), %v2709_v38  ;;  %2507 = vmatpush3.bf16.msra.mxu1 (!%p2253_p5), %v2709_v38 }
 0x576   : > { %v2429_v46 = vpop.f32.mrb[12].mxu1  ;;  %1667 = sbr.rel (%p2253_p5) target bundleno = 1775 (0x6ef), region = 64  ;;  %1771 = vperm.xlu0 (!%p2253_p5), %2703, %v1733_v57   ;;  %1781 = vperm.xlu1 (!%p2253_p5), %2704, %v1735_v58  }
 0x577   : > { %v1630_v21 = vadd.f32 %v2429_v46, %v1509_v55  ;;  %v1601_v43 = vpop.f32.mrb[13].mxu1  ;;  %v1705_v55 = vmul.f32 (!%p2253_p5), %v2730_v10, %v3591_v42  ;;  %v2734_v46 = vpop.eup (!%p2253_p5), %2733 }
 0x578   : > { %v1628_v23 = vadd.f32 %v1601_v43, %v1507_v27  ;;  %v2430_v32 = vpop.f32.mrb[14].mxu1  ;;  %v2710_v27 = vld [vmem:[%s3774_s6 + $0x28] sm:$0xff] (!%p2253_p5)   ;;  %v1704_v43 = vmul.f32 (!%p2253_p5), %v2732_v56, %v3593_v1 }
 0x579   : > { %1646 = vst [vmem:[#allocation6 + $0x70] sm:$0xff] %v1630_v21  ;;  %v1631_v62 = vadd.f32 %v2430_v32, %v1510_v34  ;;  %v1604_v28 = vpop.f32.mrb[15].mxu1  ;;  %v1734_v34 = vmul.f32 (!%p2253_p5), %v2724_v19, %v1718_v37  ;;  %v1726_v21 = vsub.f32 (!%p2253_p5), 2.0, %v1710_v48  ;;  %v1721_v32 = vsub.f32 (!%p2253_p5), 2.0, %v1705_v55  ;;  %2441 = vmatprep.subr.bf16.mxu0 (!%p2253_p5), %v2710_v27  ;;  %2500 = vmatprep.subr.bf16.mxu1 (!%p2253_p5), %v2710_v27  ;;  %v1756_v20 = vld [vmem:[#allocation6 + $0x40] sm:$0xff] (!%p2253_p5)  ;;  %v1749_v19 = vld [vmem:[#allocation6 + $0x8] sm:$0xff] (!%p2253_p5) }
 0x57a   : > { %1644 = vst [vmem:[#allocation6 + $0x60] sm:$0xff] %v1628_v23  ;;  %v1629_v35 = vadd.f32 %v1604_v28, %v1508_v49  ;;  %v2736_v49 = vpop.eup (!%p2253_p5), %2735  ;;  %v1743_v23 = vmul.f32 (!%p2253_p5), %v2726_v33, %v1727_v45  ;;  %v2711_v28 = vld [vmem:[%s3774_s6 + $0x30] sm:$0xff] (!%p2253_p5)   ;;  %v1720_v39 = vsub.f32 (!%p2253_p5), 2.0, %v1704_v43  ;;  %2442 = vmatpush3.bf16.msra.mxu0 (!%p2253_p5), %v2710_v27  ;;  %2508 = vmatpush3.bf16.msra.mxu1 (!%p2253_p5), %v2710_v27  ;;  %v1759_v57 = vld [vmem:[#allocation6 + $0x58] sm:$0xff] (!%p2253_p5)  ;;  %v1753_v55 = vld [vmem:[#allocation6 + $0x28] sm:$0xff] (!%p2253_p5) }
 0x57b   : > { %1647 = vst [vmem:[#allocation6 + $0x78] sm:$0xff] %v1631_v62  ;;  %v1713_v62 = vmul.f32 (!%p2253_p5), %v2734_v46, %v3603_v44  ;;  %1776 = vperm.xlu0 (!%p2253_p5), %2703, %v1734_v34   ;;  %v1742_v3 = vmul.f32 (!%p2253_p5), %v2728_v7, %v1726_v21  ;;  %v1712_v13 = vmul.f32 (!%p2253_p5), %v2736_v49, %v3606_v15  ;;  %v1757_v16 = vld [vmem:[#allocation6 + $0x48] sm:$0xff] (!%p2253_p5)  ;;  %v1750_v7 = vld [vmem:[#allocation6 + $0x10] sm:$0xff] (!%p2253_p5)  ;;  %v1752_v27 = vld [vmem:[#allocation6 + $0x20] sm:$0xff] (!%p2253_p5) }
 0x57c   : > { %1645 = vst [vmem:[#allocation6 + $0x68] sm:$0xff] %v1629_v35  ;;  %v2738_v35 = vpop.eup (!%p2253_p5), %2737  ;;  %1821 = vperm.xlu1 (!%p2253_p5), %2704, %v1743_v23   ;;  %v1737_v63 = vmul.f32 (!%p2253_p5), %v2730_v10, %v1721_v32  ;;  %2443 = vmatprep.subr.bf16.mxu0 (!%p2253_p5), %v2711_v28  ;;  %v1736_v42 = vmul.f32 (!%p2253_p5), %v2732_v56, %v1720_v39  ;;  %v1758_v37 = vld [vmem:[#allocation6 + $0x50] sm:$0xff] (!%p2253_p5) }
 0x57d   : > { %v2740_v29 = vpop.eup %2739  ;;  %v1729_v54 = vsub.f32 2.0, %v1713_v62  ;;  %v1707_v47 = vmul.f32 %v2738_v35, %v3613_v31  ;;  %v1728_v1 = vsub.f32 2.0, %v1712_v13  ;;  %2501 = vmatprep.subr.bf16.mxu1 %v2711_v28  ;;  %v1755_v13 = vld [vmem:[#allocation6 + $0x38] sm:$0xff] }
 0x57e   : > { %v2742_v18 = vpop.eup %2741  ;;  %v1706_v41 = vmul.f32 %v2740_v29, %v3618_v0  ;;  %2444 = vmatpush3.bf16.msra.mxu0 %v2711_v28  ;;  %2509 = vmatpush3.bf16.msra.mxu1 %v2711_v28  ;;  %v1748_v0 = vld [vmem:[#allocation6] sm:$0xff] }
 0x57f   : > { %1816 = vperm.xlu0 %2703, %v1742_v3   ;;  %v2744_v12 = vpop.eup %2743  ;;  %v1745_v44 = vmul.f32 %v2734_v46, %v1729_v54  ;;  %v1723_v15 = vsub.f32 2.0, %v1707_v47  ;;  %v1715_v2 = vmul.f32 %v2742_v18, %v3622_v9  ;;  %2445 = vmatprep.subr.bf16.mxu0 %v2712_v61  ;;  %v1744_v30 = vmul.f32 %v2736_v49, %v1728_v1 }
 0x580   : > { %1791 = vperm.xlu1 %2704, %v1737_v63   ;;  %v1722_v26 = vsub.f32 2.0, %v1706_v41  ;;  %v1714_v4 = vmul.f32 %v2744_v12, %v1682_v60  ;;  %2502 = vmatprep.subr.bf16.mxu1 %v2712_v61  ;;  %v1762_v1 = vld [vmem:[#allocation6 + $0x70] sm:$0xff] }
 0x581   : > { %v1739_v51 = vmul.f32 %v2738_v35, %v1723_v15  ;;  %v1731_v40 = vsub.f32 2.0, %v1715_v2  ;;  %v1760_v32 = vld [vmem:[#allocation6 + $0x60] sm:$0xff] }
 0x582   : > { %2446 = vmatpush3.bf16.msra.mxu0 %v2712_v61  ;;  %2510 = vmatpush3.bf16.msra.mxu1 %v2712_v61  ;;  %v1738_v36 = vmul.f32 %v2740_v29, %v1722_v26  ;;  %v1730_v11 = vsub.f32 2.0, %v1714_v4  ;;  %v1754_v29 = vld [vmem:[#allocation6 + $0x30] sm:$0xff]  ;;  %v3648_v26 = vld [vmem:[%s3775_s7] ss:$0 sm:$0xff] }
 0x583   : > { %1786 = vperm.xlu0 %2703, %v1736_v42   ;;  %v1747_v8 = vmul.f32 %v2742_v18, %v1731_v40  ;;  %v1761_v23 = vld [vmem:[#allocation6 + $0x68] sm:$0xff]  ;;  %v1763_v42 = vld [vmem:[#allocation6 + $0x78] sm:$0xff] }
 0x584   : > { %1831 = vperm.xlu1 %2704, %v1745_v44   ;;  %v1746_v31 = vmul.f32 %v2744_v12, %v1730_v11  ;;  %v2036_v11 = vld [vmem:[%s3009_s12] sm:$0xff] }
 0x587   : > { %1826 = vperm.xlu0 %2703, %v1744_v30  }
 0x588   : > { %1801 = vperm.xlu1 %2704, %v1739_v51   ;;  %v2038_v51 = vld [vmem:[%s3009_s12 + $0x10] sm:$0xff] }
 0x58b   : > { %1796 = vperm.xlu0 %2703, %v1738_v36  }
 0x58c   : > { %1841 = vperm.xlu1 %2704, %v1747_v8  }
 0x58f   : > { %1836 = vperm.xlu0 %2703, %v1746_v31  }
 0x5ec   : > { %v1807_v17 = vpop.permute.xlu1 %1806 }
 0x5ed   : > { %v1852_v52 = vmul.f32 %v1807_v17, %v1756_v20  ;;  %v2039_v17 = vld [vmem:[%s3009_s12 + $0x18] sm:$0xff] }
 0x5f1   : > { %v1767_v22 = vpop.permute.xlu0 %1766  ;;  %v1812_v6 = vpop.permute.xlu1 %1811 }
 0x5f2   : > { %v1853_v25 = vmul.f32 %v1812_v6, %v1757_v16  ;;  %v1844_v50 = vmul.f32 %v1767_v22, %v1748_v0  ;;  %v2037_v0 = vld [vmem:[%s3009_s12 + $0x8] sm:$0xff] }
 0x5f4   : > { %v1864_v24 = vpack.c.bf16 %v1853_v25, %v1852_v52  ;;  %v2046_v25 = vld [vmem:[%s3009_s12 + $0x50] sm:$0xff] }
 0x5f5   : > { %v1772_v33 = vpop.permute.xlu0 %1771  ;;  %v1782_v5 = vpop.permute.xlu1 %1781 }
 0x5f6   : > { %v1845_v59 = vmul.f32 %v1772_v33, %v1749_v19  ;;  %v1847_v9 = vmul.f32 %v1782_v5, %v1751_v53  ;;  %2455 = vmatprep.mubr.bf16.mxu1 %v1864_v24  ;;  %v2044_v53 = vld [vmem:[%s3009_s12 + $0x40] sm:$0xff] }
 0x5f8   : > { %v1860_v14 = vpack.c.bf16 %v1845_v59, %v1844_v50 }
 0x5fa   : > { %v1777_v38 = vpop.permute.xlu0 %1776  ;;  %2447 = vmatprep.mubr.bf16.mxu0 %v1860_v14  ;;  %v2047_v14 = vld [vmem:[%s3009_s12 + $0x58] sm:$0xff] }
 0x5fb   : > { %v1846_v10 = vmul.f32 %v1777_v38, %v1750_v7  ;;  %v1822_v60 = vpop.permute.xlu1 %1821 }
 0x5fc   : > { %v1855_v56 = vmul.f32 %v1822_v60, %v1759_v57  ;;  %v2045_v57 = vld [vmem:[%s3009_s12 + $0x48] sm:$0xff] }
 0x5fd   : > { %v1861_v48 = vpack.c.bf16 %v1847_v9, %v1846_v10 }
 0x5fe   : > { %v1817_v58 = vpop.permute.xlu0 %1816 }
 0x5ff   : > { %v1854_v45 = vmul.f32 %v1817_v58, %v1758_v37  ;;  %2448 = vmatmul.mubr.bf16.vlgmr.msra.gmra.mrb[0].mxu0 %v1861_v48  ;;  %v1792_v34 = vpop.permute.xlu1 %1791 }
 0x600   : > { %v1849_v21 = vmul.f32 %v1792_v34, %v1753_v55 }
 0x601   : > { %v1865_v46 = vpack.c.bf16 %v1855_v56, %v1854_v45  ;;  %v2042_v45 = vld [vmem:[%s3009_s12 + $0x30] sm:$0xff] }
 0x602   : > { %v1787_v43 = vpop.permute.xlu0 %1786 }
 0x603   : > { %v1848_v49 = vmul.f32 %v1787_v43, %v1752_v27  ;;  %2456 = vmatmul.mubr.bf16.vlgmr.msra.gmra.mrb[0].mxu1 %v1865_v46  ;;  %v1832_v28 = vpop.permute.xlu1 %1831  ;;  %v2040_v46 = vld [vmem:[%s3009_s12 + $0x20] sm:$0xff]  ;;  %v2043_v43 = vld [vmem:[%s3009_s12 + $0x38] sm:$0xff] }
 0x604   : > { %v1857_v35 = vmul.f32 %v1832_v28, %v1761_v23 }
 0x605   : > { %v1862_v62 = vpack.c.bf16 %v1849_v21, %v1848_v49 }
 0x606   : > { %v1827_v3 = vpop.permute.xlu0 %1826 }
 0x607   : > { %v1856_v39 = vmul.f32 %v1827_v3, %v1760_v32  ;;  %2451 = vmatprep.mubr.bf16.mxu0 %v1862_v62  ;;  %v1802_v54 = vpop.permute.xlu1 %1801  ;;  %v2041_v62 = vld [vmem:[%s3009_s12 + $0x28] sm:$0xff] }
 0x608   : > { %v1851_v47 = vmul.f32 %v1802_v54, %v1755_v13  ;;  %v2048_v54 = vld [vmem:[%s3009_s12 + $0x60] sm:$0xff] }
 0x609   : > { %v1866_v63 = vpack.c.bf16 %v1857_v35, %v1856_v39  ;;  %v2050_v39 = vld [vmem:[%s3009_s12 + $0x70] sm:$0xff] }
 0x60a   : > { %v1797_v61 = vpop.permute.xlu0 %1796 }
 0x60b   : > { %v1850_v18 = vmul.f32 %v1797_v61, %v1754_v29  ;;  %2459 = vmatprep.mubr.bf16.mxu1 %v1866_v63  ;;  %v1842_v12 = vpop.permute.xlu1 %1841 }
 0x60c   : > { %v1859_v44 = vmul.f32 %v1842_v12, %v1763_v42  ;;  %v2051_v42 = vld [vmem:[%s3009_s12 + $0x78] sm:$0xff] }
 0x60d   : > { %v1863_v41 = vpack.c.bf16 %v1851_v47, %v1850_v18 }
 0x60e   : > { %v1837_v15 = vpop.permute.xlu0 %1836 }
 0x60f   : > { %v1858_v2 = vmul.f32 %v1837_v15, %v1762_v1  ;;  %2452 = vmatmul.mubr.bf16.gmra.mrb[4].mxu0 %v1863_v41 }
 0x611   : > { %v1867_v30 = vpack.c.bf16 %v1859_v44, %v1858_v2  ;;  %v2049_v44 = vld [vmem:[%s3009_s12 + $0x68] sm:$0xff] }
 0x613   : > { %2460 = vmatmul.mubr.bf16.gmra.mrb[4].mxu1 %v1867_v30 }
 0x6d2   : > { %v2449_v4 = vpop.f32.mrb[0].mxu0 }
 0x6d3   : > { %v1982_v40 = vadd.f32 %v2449_v4, %v3648_v26  ;;  %v1973_v36 = vpop.f32.mrb[1].mxu0 }
 0x6d4   : > { %v1974_v8 = vadd.f32 %v3648_v26, %v1973_v36  ;;  %v2450_v31 = vpop.f32.mrb[2].mxu0 }
 0x6d5   : > { %v2054_v22 = vadd.f32 %v2038_v51, %v1982_v40  ;;  %v1985_v20 = vadd.f32 %v2450_v31, %v3648_v26  ;;  %v1976_v16 = vpop.f32.mrb[3].mxu0 }
 0x6d6   : > { %v2052_v19 = vadd.f32 %v2036_v11, %v1974_v8  ;;  %v1977_v6 = vadd.f32 %v3648_v26, %v1976_v16  ;;  %v2457_v52 = vpop.f32.mrb[0].mxu1 }
 0x6d7   : > { %2070 = vst [vmem:[%s3017_s22 + $0x10] sm:$0xff] %v2054_v22  ;;  %v2055_v33 = vadd.f32 %v2039_v17, %v1985_v20  ;;  %v2014_v50 = vadd.f32 %v2457_v52, %v3648_v26  ;;  %v2005_v59 = vpop.f32.mrb[1].mxu1 }
 0x6d8   : > { %2068 = vst [vmem:[%s3017_s22] sm:$0xff] %v2052_v19  ;;  %v2053_v7 = vadd.f32 %v2037_v0, %v1977_v6  ;;  %v2006_v24 = vadd.f32 %v3648_v26, %v2005_v59  ;;  %v2458_v5 = vpop.f32.mrb[2].mxu1 }
 0x6d9   : > { %2071 = vst [vmem:[%s3017_s22 + $0x18] sm:$0xff] %v2055_v33  ;;  %v2062_v9 = vadd.f32 %v2046_v25, %v2014_v50  ;;  %v2017_v38 = vadd.f32 %v2458_v5, %v3648_v26  ;;  %v2008_v10 = vpop.f32.mrb[3].mxu1 }
 0x6da   : > { %2069 = vst [vmem:[%s3017_s22 + $0x8] sm:$0xff] %v2053_v7  ;;  %v2060_v37 = vadd.f32 %v2044_v53, %v2006_v24  ;;  %v2009_v48 = vadd.f32 %v3648_v26, %v2008_v10 }
 0x6db   : > { %2078 = vst [vmem:[%s3017_s22 + $0x50] sm:$0xff] %v2062_v9  ;;  %v2063_v60 = vadd.f32 %v2047_v14, %v2017_v38 }
 0x6dc   : > { %2076 = vst [vmem:[%s3017_s22 + $0x40] sm:$0xff] %v2060_v37  ;;  %v2061_v56 = vadd.f32 %v2045_v57, %v2009_v48 }
 0x6dd   : > { %2079 = vst [vmem:[%s3017_s22 + $0x58] sm:$0xff] %v2063_v60 }
 0x6de   : > { %2077 = vst [vmem:[%s3017_s22 + $0x48] sm:$0xff] %v2061_v56 }
 0x6e2   : > { %v2453_v58 = vpop.f32.mrb[4].mxu0 }
 0x6e3   : > { %v1998_v55 = vadd.f32 %v2453_v58, %v3648_v26  ;;  %v1989_v27 = vpop.f32.mrb[5].mxu0 }
 0x6e4   : > { %v1990_v34 = vadd.f32 %v3648_v26, %v1989_v27  ;;  %v2454_v21 = vpop.f32.mrb[6].mxu0 }
 0x6e5   : > { %v2058_v49 = vadd.f32 %v2042_v45, %v1998_v55  ;;  %v2001_v23 = vadd.f32 %v2454_v21, %v3648_v26  ;;  %v1992_v32 = vpop.f32.mrb[7].mxu0 }
 0x6e6   : > { %v2056_v28 = vadd.f32 %v2040_v46, %v1990_v34  ;;  %v1993_v35 = vadd.f32 %v3648_v26, %v1992_v32  ;;  %v2461_v3 = vpop.f32.mrb[4].mxu1 }
 0x6e7   : > { %2074 = vst [vmem:[%s3017_s22 + $0x30] sm:$0xff] %v2058_v49  ;;  %v2059_v13 = vadd.f32 %v2043_v43, %v2001_v23  ;;  %v2030_v29 = vadd.f32 %v2461_v3, %v3648_v26  ;;  %v2021_v63 = vpop.f32.mrb[5].mxu1 }
 0x6e8   : > { %2072 = vst [vmem:[%s3017_s22 + $0x20] sm:$0xff] %v2056_v28  ;;  %v2057_v47 = vadd.f32 %v2041_v62, %v1993_v35  ;;  %v2022_v61 = vadd.f32 %v3648_v26, %v2021_v63  ;;  %v2462_v18 = vpop.f32.mrb[6].mxu1 }
 0x6e9   : > { %2075 = vst [vmem:[%s3017_s22 + $0x38] sm:$0xff] %v2059_v13  ;;  %v2066_v1 = vadd.f32 %v2050_v39, %v2030_v29  ;;  %v2033_v41 = vadd.f32 %v2462_v18, %v3648_v26  ;;  %v2024_v12 = vpop.f32.mrb[7].mxu1 }
 0x6ea   : > { %2073 = vst [vmem:[%s3017_s22 + $0x28] sm:$0xff] %v2057_v47  ;;  %v2064_v15 = vadd.f32 %v2048_v54, %v2022_v61  ;;  %v2025_v2 = vadd.f32 %v3648_v26, %v2024_v12 }
 0x6eb   : > { %2082 = vst [vmem:[%s3017_s22 + $0x70] sm:$0xff] %v2066_v1  ;;  %v2067_v30 = vadd.f32 %v2051_v42, %v2033_v41 }
 0x6ec   : > { %2080 = vst [vmem:[%s3017_s22 + $0x60] sm:$0xff] %v2064_v15  ;;  %v2065_v4 = vadd.f32 %v2049_v44, %v2025_v2 }
 0x6ed   : > { %2083 = vst [vmem:[%s3017_s22 + $0x78] sm:$0xff] %v2067_v30 }
 0x6ee   : > { %2081 = vst [vmem:[%s3017_s22 + $0x68] sm:$0xff] %v2065_v4 }
 0x6ef PF: > { %s2265_s13 = sshll.u32 %s2839_s10, 5  ;;  %s2100_s17 = sshll.u32 %s3017_s22, 4  ;;  %s3701_s17 = int_to_ptr.vmem [resolvable:$true] %s2100_s17 }
 0x6f0   : > { %s2097_s11 = sadd.s32 %s2265_s13, %s2997_s16  ;;  %s3801_s19 = sand.u32 1, %s2823_s28  }
 0x6f1   : > { %s2266_s12 = sshll.u32 %s2097_s11, 7  ;;  %s3710_s21 = scalar_lea.sflag [#allocation8], %s3801_s19 }
 0x6f2   : > { %s3706_s18 = scalar_lea.hbm %s3776_s8, %s2266_s12  ;;  %s2745_s26 = scalar_lea.vmem %s3701_s17, 2048 }
 0x6f3   : > { %p2746_p8 = scmp.ne.s32.totalorder %s3701_s17, %s2745_s26  ;;  %s2862_s10 = smov [#allocation7]  }
 0x6f4   : > { %s2749_s16 = sshll.u32 %s2862_s10, 4  ;;  %s2750_s16 = int_to_ptr.vmem [resolvable:$false] %s2749_s16 }
 0x6f5   : > { %p2747_p9 = pnand %p2746_p8, %p2972_p6  ;;  %s2751_s22 = scalar_lea.vmem %s2750_s16, 4096 }
 0x6f6   : > { %p2752_p11 = scmp.lt.s32.totalorder %s3701_s17, %s2750_s16  ;;  %p2753_p12 = scmp.lt.s32.totalorder %s2751_s22, %s2745_s26 }
 0x6f7   : > { %p2748_p10 = pneg %p2747_p9 }
 0x6f8   : > { %p2754_p13 = por %p2753_p12, %p2752_p11 }
 0x6fa   : > { %p2755_p0 = pnand %p2754_p13, %p2748_p10 }
 0x6fc   : > { %2758 = shalt.err (!%p2755_p0)
}
 0x6fd   : > { %s2759_s15 = scalar_lea.hbm %s3706_s18, 2048  ;;  %s2763_s24 = scalar_lea.hbm %s3776_s8, 8192 }
 0x6fe   : > { %p2760_p1 = scmp.ne.s32.totalorder %s3706_s18, %s2759_s15  ;;  %p2764_p4 = scmp.lt.u32.totalorder %s3706_s18, %s3776_s8 }
 0x6ff   : > { %p2765_p5 = scmp.lt.u32.totalorder %s2763_s24, %s2759_s15  ;;  %p2767_p9 = scmp.lt.u32.totalorder %s2759_s15, %s3706_s18 }
 0x700   : > { %p2761_p2 = pnand %p2760_p1, %p2972_p6 }
 0x701   : > { %p2766_p8 = por %p2765_p5, %p2764_p4 }
 0x702   : > { %p2762_p3 = pneg %p2761_p2 }
 0x703   : > { %p2768_p10 = por %p2767_p9, %p2766_p8 }
 0x705   : > { %p2769_p11 = pnand %p2768_p10, %p2762_p3 }
 0x707   : > { %2772 = shalt.err (!%p2769_p11)
}
 0x708   : > { %s2863_s23 = smov 128   ;;  %s2864_s13 = smov 8  }
 0x709   : > { %2511 = dma.vmem_to_hbm [thread:$0]  (%p2972_p6), %s3701_s17, 2048, %s3706_s18, %s3710_s21, %s2863_s23, %s2863_s23, %s2864_s13  }
 0x70a PF: > { %s3802_s11 = sld [smem:[#allocation15_spill]]  ;;  %s3803_s12 = sld [smem:[#allocation10_spill]] }
 0x710   : > { %p2517_p12 = scmp.ge.s32.totalorder %s3802_s11, 2  ;;  %s2115_s29 = sand.u32 1, %s3803_s12  }
 0x711   : > { %s2116_s19 = scalar_lea.sflag [#allocation8], %s2115_s29 }
 0x712   : > { %p2514_p13 = pnand %p2517_p12, %p2979_p7 }
 0x714   : > { %2814 = dma.done.wait (!%p2514_p13), %s2116_s19, 2048  }
 0x715   : > { %2816 = vsyncadd (!%p2514_p13), %s2116_s19, 4294965248  ;;  %s21_s14 = sadd.s32 1, %s3802_s11   ;;  %s3805_s26 = sld [smem:[#allocation11_spill]] }
 0x716   : > { %p18_p0 = scmp.ge.s32.totalorder %s21_s14, 10   ;;  %s3806_s29 = sld [smem:[#allocation20_spill]] }
 0x717   : > { %s3807_s30 = sld [smem:[#allocation12_spill]]  ;;  %s3808_s9 = sld [smem:[#allocation13_spill]] }
 0x718   : > { %s3809_s10 = sld [smem:[#allocation14_spill]]  ;;  %s3810_s11 = sld [smem:[#allocation16_spill]] }
 0x719   : > { %s3811_s12 = sld [smem:[#allocation17_spill]]  ;;  %s3812_s13 = sld [smem:[#allocation19_spill]] }
 0x71a   : > { %s3813_s27 = smov %s2823_s28  ;;  %20 = sbr.rel (!%p18_p0) target bundleno = 6 (0x6), region = 104 }
 0x71b   : > { %s3814_s28 = smov %s3805_s26 }
 0x721   :  { %2121 = vsyncpa [#allocation8], 1 }
 0x722   :  { %2123 = vsyncpa [#allocation8 + $0x1], 1 }

</bundles_post_ra>
